<compile_context>
chip_gen: v7x
topology: tpu7x:2x2x1
jax: 0.10.0
libtpu: 0.0.40
codegen_flags: <defaults>
</compile_context>

<pallas_src>
import math

import jax
import jax.numpy as jnp
from jax.experimental import pallas as pl
from jax.experimental.pallas import tpu as pltpu

DIMS = [32, 64, 128, 256, 256, 512, 512, 256, 256, 128, 64, 1]
N_LAYERS = len(DIMS) - 1  # 11 linear layers

# Padded dims: identical to DIMS except the final output, padded to a lane-dense 128.
PDIMS = list(DIMS)
PDIMS[-1] = 128

WEIGHT_DTYPE = jnp.bfloat16   # weights fetched from HBM in bf16; cast to f32 in-vreg
MAX_TILE_B = 256              # batch-tile rows per grid step for large batches


def mlp_kernel(x_ref, *refs):
    """Fused 11-layer MLP: matmul + bias + ReLU (no ReLU on the final regressor).

    refs = (w0, b0, w1, b1, ..., w10, b10, out_ref).  Weights are bf16, biases and
    activations f32; every dot accumulates in f32 on the MXU.
    """
    out_ref = refs[-1]
    params = refs[:-1]
    h = x_ref[...]  # (TILE_B, 32) f32
    for i in range(N_LAYERS):
        w = params[2 * i][...].astype(jnp.float32)   # bf16 -> f32 in vregs (HBM bytes halved)
        b = params[2 * i + 1][...]                   # (1, N) f32
        h = jnp.dot(h, w, preferred_element_type=jnp.float32) + b
        if i < N_LAYERS - 1:
            h = jnp.maximum(h, 0.0)                  # ReLU after every rep_learner layer
    out_ref[...] = h


def init_params(key):
    """PyTorch-style nn.Linear init: U(-1/sqrt(fan_in), 1/sqrt(fan_in)); weights in bf16."""
    params = []
    for i in range(N_LAYERS):
        fan_in, fan_out = DIMS[i], DIMS[i + 1]
        bound = 1.0 / math.sqrt(fan_in)
        key, kw, kb = jax.random.split(key, 3)
        w = jax.random.uniform(kw, (fan_in, fan_out), jnp.float32, -bound, bound)
        b = jax.random.uniform(kb, (fan_out,), jnp.float32, -bound, bound)
        w_p = jnp.zeros((PDIMS[i], PDIMS[i + 1]), jnp.float32).at[:fan_in, :fan_out].set(w)
        b_p = jnp.zeros((1, PDIMS[i + 1]), jnp.float32).at[0, :fan_out].set(b)
        params.append(w_p.astype(WEIGHT_DTYPE))   # bf16 weights
        params.append(b_p)                        # f32 biases (tiny)
    return params


@jax.jit
def mlp_forward(x, *params):
    B = x.shape[0]
    B_pad = ((B + 7) // 8) * 8
    if B_pad <= MAX_TILE_B:
        tile_b = B_pad
    else:
        tile_b = MAX_TILE_B
        B_pad = ((B_pad + tile_b - 1) // tile_b) * tile_b
    n_tiles = B_pad // tile_b

    x_p = jnp.zeros((B_pad, PDIMS[0]), jnp.float32).at[:B, :].set(x.astype(jnp.float32))

    # Batch axis tiled; weights/biases use a constant index_map so they stay
    # VMEM-resident across grid steps (no re-DMA after the first step).
    x_spec = pl.BlockSpec((tile_b, PDIMS[0]), lambda i: (i, 0))
    param_specs = [pl.BlockSpec(p.shape, lambda i: (0, 0)) for p in params]
    out_spec = pl.BlockSpec((tile_b, PDIMS[-1]), lambda i: (i, 0))

    # Advisory cost estimate so XLA schedules the wrapper pad/slice sensibly.
    flops = 2 * B_pad * sum(DIMS[i] * DIMS[i + 1] for i in range(N_LAYERS))
    weight_bytes = 2 * sum(PDIMS[i] * PDIMS[i + 1] for i in range(N_LAYERS))   # bf16
    bias_bytes = 4 * sum(PDIMS[i + 1] for i in range(N_LAYERS))
    io_bytes = 4 * (B_pad * PDIMS[0] + B_pad * PDIMS[-1])
    cost = pl.CostEstimate(flops=flops, transcendentals=0,
                           bytes_accessed=weight_bytes + bias_bytes + io_bytes)

    out_p = pl.pallas_call(
        mlp_kernel,
        out_shape=jax.ShapeDtypeStruct((B_pad, PDIMS[-1]), jnp.float32),
        grid_spec=pltpu.PrefetchScalarGridSpec(
            num_scalar_prefetch=0,
            grid=(n_tiles,),
            in_specs=[x_spec] + param_specs,
            out_specs=out_spec,
        ),
        compiler_params=pltpu.CompilerParams(
            # Batch tiles are independent -> "parallel" (shards across both TCs on v7x).
            dimension_semantics=("parallel",),
            # Real footprint is a few MiB (bf16 weights ~1.5 MiB + small activation
            # tiles); 32 MiB fits every chip, including v7x's 64 MiB physical VMEM.
            vmem_limit_bytes=32 * 1024 * 1024,
        ),
        cost_estimate=cost,
    )(x_p, *params)

    return out_p[:B, : DIMS[-1]]  # (B, 1)


def reference_forward(x, params):
    """Pure-JAX reference using the same bf16-quantized weights (cast back to f32)."""
    h = x.astype(jnp.float32)
    for i in range(N_LAYERS):
        w = params[2 * i].astype(jnp.float32)[: DIMS[i], : DIMS[i + 1]]
        b = params[2 * i + 1][0, : DIMS[i + 1]]
        h = h @ w + b
        if i < N_LAYERS - 1:
            h = jnp.maximum(h, 0.0)
    return h


if __name__ == "__main__":
    key = jax.random.PRNGKey(0)
    key, kx = jax.random.split(key)

    B = 8  # small demo batch
    x = jax.random.normal(kx, (B, DIMS[0]), jnp.float32)

    params = init_params(key)

    out = mlp_forward(x, *params)
    out = jax.block_until_ready(out)

    ref = reference_forward(x, params)
    assert out.shape == (B, 1), out.shape
    assert jnp.allclose(out, ref, atol=2e-3, rtol=2e-3), (out, ref)

    print("KERNEL_OK")
</pallas_src>

<mosaic_0001>
module attributes {stable_mosaic.version = 11 : i64} {
  func.func @mlp_kernel(%arg0: i32, %arg1: memref<8x32xf32, #tpu.memory_space<vmem>>, %arg2: memref<32x64xbf16, #tpu.memory_space<vmem>>, %arg3: memref<1x64xf32, #tpu.memory_space<vmem>>, %arg4: memref<64x128xbf16, #tpu.memory_space<vmem>>, %arg5: memref<1x128xf32, #tpu.memory_space<vmem>>, %arg6: memref<128x256xbf16, #tpu.memory_space<vmem>>, %arg7: memref<1x256xf32, #tpu.memory_space<vmem>>, %arg8: memref<256x256xbf16, #tpu.memory_space<vmem>>, %arg9: memref<1x256xf32, #tpu.memory_space<vmem>>, %arg10: memref<256x512xbf16, #tpu.memory_space<vmem>>, %arg11: memref<1x512xf32, #tpu.memory_space<vmem>>, %arg12: memref<512x512xbf16, #tpu.memory_space<vmem>>, %arg13: memref<1x512xf32, #tpu.memory_space<vmem>>, %arg14: memref<512x256xbf16, #tpu.memory_space<vmem>>, %arg15: memref<1x256xf32, #tpu.memory_space<vmem>>, %arg16: memref<256x256xbf16, #tpu.memory_space<vmem>>, %arg17: memref<1x256xf32, #tpu.memory_space<vmem>>, %arg18: memref<256x128xbf16, #tpu.memory_space<vmem>>, %arg19: memref<1x128xf32, #tpu.memory_space<vmem>>, %arg20: memref<128x64xbf16, #tpu.memory_space<vmem>>, %arg21: memref<1x64xf32, #tpu.memory_space<vmem>>, %arg22: memref<64x128xbf16, #tpu.memory_space<vmem>>, %arg23: memref<1x128xf32, #tpu.memory_space<vmem>>, %arg24: memref<8x128xf32, #tpu.memory_space<vmem>>) attributes {dimension_semantics = [#tpu.dimension_semantics<parallel>], iteration_bounds = array<i64: 1>, scalar_prefetch = 0 : i64, scratch_operands = 0 : i64, tpu.core_type = #tpu.core_type<tc>, window_params = [{transform_indices = @transform_0, window_bounds = array<i64: 8, 32>}, {pipeline_mode = #tpu.pipeline_mode<synchronous>, transform_indices = @transform_1, window_bounds = array<i64: 32, 64>}, {pipeline_mode = #tpu.pipeline_mode<synchronous>, transform_indices = @transform_2, window_bounds = array<i64: 1, 64>}, {pipeline_mode = #tpu.pipeline_mode<synchronous>, transform_indices = @transform_3, window_bounds = array<i64: 64, 128>}, {pipeline_mode = #tpu.pipeline_mode<synchronous>, transform_indices = @transform_4, window_bounds = array<i64: 1, 128>}, {pipeline_mode = #tpu.pipeline_mode<synchronous>, transform_indices = @transform_5, window_bounds = array<i64: 128, 256>}, {pipeline_mode = #tpu.pipeline_mode<synchronous>, transform_indices = @transform_6, window_bounds = array<i64: 1, 256>}, {pipeline_mode = #tpu.pipeline_mode<synchronous>, transform_indices = @transform_7, window_bounds = array<i64: 256, 256>}, {pipeline_mode = #tpu.pipeline_mode<synchronous>, transform_indices = @transform_8, window_bounds = array<i64: 1, 256>}, {pipeline_mode = #tpu.pipeline_mode<synchronous>, transform_indices = @transform_9, window_bounds = array<i64: 256, 512>}, {pipeline_mode = #tpu.pipeline_mode<synchronous>, transform_indices = @transform_10, window_bounds = array<i64: 1, 512>}, {pipeline_mode = #tpu.pipeline_mode<synchronous>, transform_indices = @transform_11, window_bounds = array<i64: 512, 512>}, {pipeline_mode = #tpu.pipeline_mode<synchronous>, transform_indices = @transform_12, window_bounds = array<i64: 1, 512>}, {pipeline_mode = #tpu.pipeline_mode<synchronous>, transform_indices = @transform_13, window_bounds = array<i64: 512, 256>}, {pipeline_mode = #tpu.pipeline_mode<synchronous>, transform_indices = @transform_14, window_bounds = array<i64: 1, 256>}, {pipeline_mode = #tpu.pipeline_mode<synchronous>, transform_indices = @transform_15, window_bounds = array<i64: 256, 256>}, {pipeline_mode = #tpu.pipeline_mode<synchronous>, transform_indices = @transform_16, window_bounds = array<i64: 1, 256>}, {pipeline_mode = #tpu.pipeline_mode<synchronous>, transform_indices = @transform_17, window_bounds = array<i64: 256, 128>}, {pipeline_mode = #tpu.pipeline_mode<synchronous>, transform_indices = @transform_18, window_bounds = array<i64: 1, 128>}, {pipeline_mode = #tpu.pipeline_mode<synchronous>, transform_indices = @transform_19, window_bounds = array<i64: 128, 64>}, {pipeline_mode = #tpu.pipeline_mode<synchronous>, transform_indices = @transform_20, window_bounds = array<i64: 1, 64>}, {pipeline_mode = #tpu.pipeline_mode<synchronous>, transform_indices = @transform_21, window_bounds = array<i64: 64, 128>}, {pipeline_mode = #tpu.pipeline_mode<synchronous>, transform_indices = @transform_22, window_bounds = array<i64: 1, 128>}, {transform_indices = @transform_23, window_bounds = array<i64: 8, 128>}]} {
    %c0 = arith.constant 0 : index
    %c0_0 = arith.constant 0 : index
    %0 = vector.load %arg1[%c0, %c0_0] : memref<8x32xf32, #tpu.memory_space<vmem>>, vector<8x32xf32>
    %c0_1 = arith.constant 0 : index
    %c0_2 = arith.constant 0 : index
    %1 = vector.load %arg2[%c0_1, %c0_2] : memref<32x64xbf16, #tpu.memory_space<vmem>>, vector<32x64xbf16>
    %2 = arith.extf %1 : vector<32x64xbf16> to vector<32x64xf32>
    %c0_3 = arith.constant 0 : index
    %c0_4 = arith.constant 0 : index
    %3 = vector.load %arg3[%c0_3, %c0_4] : memref<1x64xf32, #tpu.memory_space<vmem>>, vector<1x64xf32>
    %cst = arith.constant dense<0.000000e+00> : vector<8x64xf32>
    %4 = tpu.matmul %0, %2, %cst {dimension_numbers = #tpu.dot_dimension_numbers<[1], [0], [0], [1], [0, 0, 1, 1], [], []>} : vector<8x32xf32>, vector<32x64xf32>, vector<8x64xf32> -> vector<8x64xf32>
    %5 = vector.broadcast %3 : vector<1x64xf32> to vector<8x64xf32>
    %6 = arith.addf %4, %5 : vector<8x64xf32>
    %cst_5 = arith.constant 0.000000e+00 : f32
    %7 = vector.broadcast %cst_5 : f32 to vector<8x64xf32>
    %8 = arith.maximumf %6, %7 : vector<8x64xf32>
    %c0_6 = arith.constant 0 : index
    %c0_7 = arith.constant 0 : index
    %9 = vector.load %arg4[%c0_6, %c0_7] : memref<64x128xbf16, #tpu.memory_space<vmem>>, vector<64x128xbf16>
    %10 = arith.extf %9 : vector<64x128xbf16> to vector<64x128xf32>
    %c0_8 = arith.constant 0 : index
    %c0_9 = arith.constant 0 : index
    %11 = vector.load %arg5[%c0_8, %c0_9] : memref<1x128xf32, #tpu.memory_space<vmem>>, vector<1x128xf32>
    %cst_10 = arith.constant dense<0.000000e+00> : vector<8x128xf32>
    %12 = tpu.matmul %8, %10, %cst_10 {dimension_numbers = #tpu.dot_dimension_numbers<[1], [0], [0], [1], [0, 0, 1, 1], [], []>} : vector<8x64xf32>, vector<64x128xf32>, vector<8x128xf32> -> vector<8x128xf32>
    %13 = vector.broadcast %11 : vector<1x128xf32> to vector<8x128xf32>
    %14 = arith.addf %12, %13 : vector<8x128xf32>
    %cst_11 = arith.constant 0.000000e+00 : f32
    %15 = vector.broadcast %cst_11 : f32 to vector<8x128xf32>
    %16 = arith.maximumf %14, %15 : vector<8x128xf32>
    %c0_12 = arith.constant 0 : index
    %c0_13 = arith.constant 0 : index
    %17 = vector.load %arg6[%c0_12, %c0_13] : memref<128x256xbf16, #tpu.memory_space<vmem>>, vector<128x256xbf16>
    %18 = arith.extf %17 : vector<128x256xbf16> to vector<128x256xf32>
    %c0_14 = arith.constant 0 : index
    %c0_15 = arith.constant 0 : index
    %19 = vector.load %arg7[%c0_14, %c0_15] : memref<1x256xf32, #tpu.memory_space<vmem>>, vector<1x256xf32>
    %cst_16 = arith.constant dense<0.000000e+00> : vector<8x256xf32>
    %20 = tpu.matmul %16, %18, %cst_16 {dimension_numbers = #tpu.dot_dimension_numbers<[1], [0], [0], [1], [0, 0, 1, 1], [], []>} : vector<8x128xf32>, vector<128x256xf32>, vector<8x256xf32> -> vector<8x256xf32>
    %21 = vector.broadcast %19 : vector<1x256xf32> to vector<8x256xf32>
    %22 = arith.addf %20, %21 : vector<8x256xf32>
    %cst_17 = arith.constant 0.000000e+00 : f32
    %23 = vector.broadcast %cst_17 : f32 to vector<8x256xf32>
    %24 = arith.maximumf %22, %23 : vector<8x256xf32>
    %c0_18 = arith.constant 0 : index
    %c0_19 = arith.constant 0 : index
    %25 = vector.load %arg8[%c0_18, %c0_19] : memref<256x256xbf16, #tpu.memory_space<vmem>>, vector<256x256xbf16>
    %26 = arith.extf %25 : vector<256x256xbf16> to vector<256x256xf32>
    %c0_20 = arith.constant 0 : index
    %c0_21 = arith.constant 0 : index
    %27 = vector.load %arg9[%c0_20, %c0_21] : memref<1x256xf32, #tpu.memory_space<vmem>>, vector<1x256xf32>
    %cst_22 = arith.constant dense<0.000000e+00> : vector<8x256xf32>
    %28 = tpu.matmul %24, %26, %cst_22 {dimension_numbers = #tpu.dot_dimension_numbers<[1], [0], [0], [1], [0, 0, 1, 1], [], []>} : vector<8x256xf32>, vector<256x256xf32>, vector<8x256xf32> -> vector<8x256xf32>
    %29 = vector.broadcast %27 : vector<1x256xf32> to vector<8x256xf32>
    %30 = arith.addf %28, %29 : vector<8x256xf32>
    %cst_23 = arith.constant 0.000000e+00 : f32
    %31 = vector.broadcast %cst_23 : f32 to vector<8x256xf32>
    %32 = arith.maximumf %30, %31 : vector<8x256xf32>
    %c0_24 = arith.constant 0 : index
    %c0_25 = arith.constant 0 : index
    %33 = vector.load %arg10[%c0_24, %c0_25] : memref<256x512xbf16, #tpu.memory_space<vmem>>, vector<256x512xbf16>
    %34 = arith.extf %33 : vector<256x512xbf16> to vector<256x512xf32>
    %c0_26 = arith.constant 0 : index
    %c0_27 = arith.constant 0 : index
    %35 = vector.load %arg11[%c0_26, %c0_27] : memref<1x512xf32, #tpu.memory_space<vmem>>, vector<1x512xf32>
    %cst_28 = arith.constant dense<0.000000e+00> : vector<8x512xf32>
    %36 = tpu.matmul %32, %34, %cst_28 {dimension_numbers = #tpu.dot_dimension_numbers<[1], [0], [0], [1], [0, 0, 1, 1], [], []>} : vector<8x256xf32>, vector<256x512xf32>, vector<8x512xf32> -> vector<8x512xf32>
    %37 = vector.broadcast %35 : vector<1x512xf32> to vector<8x512xf32>
    %38 = arith.addf %36, %37 : vector<8x512xf32>
    %cst_29 = arith.constant 0.000000e+00 : f32
    %39 = vector.broadcast %cst_29 : f32 to vector<8x512xf32>
    %40 = arith.maximumf %38, %39 : vector<8x512xf32>
    %c0_30 = arith.constant 0 : index
    %c0_31 = arith.constant 0 : index
    %41 = vector.load %arg12[%c0_30, %c0_31] : memref<512x512xbf16, #tpu.memory_space<vmem>>, vector<512x512xbf16>
    %42 = arith.extf %41 : vector<512x512xbf16> to vector<512x512xf32>
    %c0_32 = arith.constant 0 : index
    %c0_33 = arith.constant 0 : index
    %43 = vector.load %arg13[%c0_32, %c0_33] : memref<1x512xf32, #tpu.memory_space<vmem>>, vector<1x512xf32>
    %cst_34 = arith.constant dense<0.000000e+00> : vector<8x512xf32>
    %44 = tpu.matmul %40, %42, %cst_34 {dimension_numbers = #tpu.dot_dimension_numbers<[1], [0], [0], [1], [0, 0, 1, 1], [], []>} : vector<8x512xf32>, vector<512x512xf32>, vector<8x512xf32> -> vector<8x512xf32>
    %45 = vector.broadcast %43 : vector<1x512xf32> to vector<8x512xf32>
    %46 = arith.addf %44, %45 : vector<8x512xf32>
    %cst_35 = arith.constant 0.000000e+00 : f32
    %47 = vector.broadcast %cst_35 : f32 to vector<8x512xf32>
    %48 = arith.maximumf %46, %47 : vector<8x512xf32>
    %c0_36 = arith.constant 0 : index
    %c0_37 = arith.constant 0 : index
    %49 = vector.load %arg14[%c0_36, %c0_37] : memref<512x256xbf16, #tpu.memory_space<vmem>>, vector<512x256xbf16>
    %50 = arith.extf %49 : vector<512x256xbf16> to vector<512x256xf32>
    %c0_38 = arith.constant 0 : index
    %c0_39 = arith.constant 0 : index
    %51 = vector.load %arg15[%c0_38, %c0_39] : memref<1x256xf32, #tpu.memory_space<vmem>>, vector<1x256xf32>
    %cst_40 = arith.constant dense<0.000000e+00> : vector<8x256xf32>
    %52 = tpu.matmul %48, %50, %cst_40 {dimension_numbers = #tpu.dot_dimension_numbers<[1], [0], [0], [1], [0, 0, 1, 1], [], []>} : vector<8x512xf32>, vector<512x256xf32>, vector<8x256xf32> -> vector<8x256xf32>
    %53 = vector.broadcast %51 : vector<1x256xf32> to vector<8x256xf32>
    %54 = arith.addf %52, %53 : vector<8x256xf32>
    %cst_41 = arith.constant 0.000000e+00 : f32
    %55 = vector.broadcast %cst_41 : f32 to vector<8x256xf32>
    %56 = arith.maximumf %54, %55 : vector<8x256xf32>
    %c0_42 = arith.constant 0 : index
    %c0_43 = arith.constant 0 : index
    %57 = vector.load %arg16[%c0_42, %c0_43] : memref<256x256xbf16, #tpu.memory_space<vmem>>, vector<256x256xbf16>
    %58 = arith.extf %57 : vector<256x256xbf16> to vector<256x256xf32>
    %c0_44 = arith.constant 0 : index
    %c0_45 = arith.constant 0 : index
    %59 = vector.load %arg17[%c0_44, %c0_45] : memref<1x256xf32, #tpu.memory_space<vmem>>, vector<1x256xf32>
    %cst_46 = arith.constant dense<0.000000e+00> : vector<8x256xf32>
    %60 = tpu.matmul %56, %58, %cst_46 {dimension_numbers = #tpu.dot_dimension_numbers<[1], [0], [0], [1], [0, 0, 1, 1], [], []>} : vector<8x256xf32>, vector<256x256xf32>, vector<8x256xf32> -> vector<8x256xf32>
    %61 = vector.broadcast %59 : vector<1x256xf32> to vector<8x256xf32>
    %62 = arith.addf %60, %61 : vector<8x256xf32>
    %cst_47 = arith.constant 0.000000e+00 : f32
    %63 = vector.broadcast %cst_47 : f32 to vector<8x256xf32>
    %64 = arith.maximumf %62, %63 : vector<8x256xf32>
    %c0_48 = arith.constant 0 : index
    %c0_49 = arith.constant 0 : index
    %65 = vector.load %arg18[%c0_48, %c0_49] : memref<256x128xbf16, #tpu.memory_space<vmem>>, vector<256x128xbf16>
    %66 = arith.extf %65 : vector<256x128xbf16> to vector<256x128xf32>
    %c0_50 = arith.constant 0 : index
    %c0_51 = arith.constant 0 : index
    %67 = vector.load %arg19[%c0_50, %c0_51] : memref<1x128xf32, #tpu.memory_space<vmem>>, vector<1x128xf32>
    %cst_52 = arith.constant dense<0.000000e+00> : vector<8x128xf32>
    %68 = tpu.matmul %64, %66, %cst_52 {dimension_numbers = #tpu.dot_dimension_numbers<[1], [0], [0], [1], [0, 0, 1, 1], [], []>} : vector<8x256xf32>, vector<256x128xf32>, vector<8x128xf32> -> vector<8x128xf32>
    %69 = vector.broadcast %67 : vector<1x128xf32> to vector<8x128xf32>
    %70 = arith.addf %68, %69 : vector<8x128xf32>
    %cst_53 = arith.constant 0.000000e+00 : f32
    %71 = vector.broadcast %cst_53 : f32 to vector<8x128xf32>
    %72 = arith.maximumf %70, %71 : vector<8x128xf32>
    %c0_54 = arith.constant 0 : index
    %c0_55 = arith.constant 0 : index
    %73 = vector.load %arg20[%c0_54, %c0_55] : memref<128x64xbf16, #tpu.memory_space<vmem>>, vector<128x64xbf16>
    %74 = arith.extf %73 : vector<128x64xbf16> to vector<128x64xf32>
    %c0_56 = arith.constant 0 : index
    %c0_57 = arith.constant 0 : index
    %75 = vector.load %arg21[%c0_56, %c0_57] : memref<1x64xf32, #tpu.memory_space<vmem>>, vector<1x64xf32>
    %cst_58 = arith.constant dense<0.000000e+00> : vector<8x64xf32>
    %76 = tpu.matmul %72, %74, %cst_58 {dimension_numbers = #tpu.dot_dimension_numbers<[1], [0], [0], [1], [0, 0, 1, 1], [], []>} : vector<8x128xf32>, vector<128x64xf32>, vector<8x64xf32> -> vector<8x64xf32>
    %77 = vector.broadcast %75 : vector<1x64xf32> to vector<8x64xf32>
    %78 = arith.addf %76, %77 : vector<8x64xf32>
    %cst_59 = arith.constant 0.000000e+00 : f32
    %79 = vector.broadcast %cst_59 : f32 to vector<8x64xf32>
    %80 = arith.maximumf %78, %79 : vector<8x64xf32>
    %c0_60 = arith.constant 0 : index
    %c0_61 = arith.constant 0 : index
    %81 = vector.load %arg22[%c0_60, %c0_61] : memref<64x128xbf16, #tpu.memory_space<vmem>>, vector<64x128xbf16>
    %82 = arith.extf %81 : vector<64x128xbf16> to vector<64x128xf32>
    %c0_62 = arith.constant 0 : index
    %c0_63 = arith.constant 0 : index
    %83 = vector.load %arg23[%c0_62, %c0_63] : memref<1x128xf32, #tpu.memory_space<vmem>>, vector<1x128xf32>
    %cst_64 = arith.constant dense<0.000000e+00> : vector<8x128xf32>
    %84 = tpu.matmul %80, %82, %cst_64 {dimension_numbers = #tpu.dot_dimension_numbers<[1], [0], [0], [1], [0, 0, 1, 1], [], []>} : vector<8x64xf32>, vector<64x128xf32>, vector<8x128xf32> -> vector<8x128xf32>
    %85 = vector.broadcast %83 : vector<1x128xf32> to vector<8x128xf32>
    %86 = arith.addf %84, %85 : vector<8x128xf32>
    %c0_65 = arith.constant 0 : index
    %c0_66 = arith.constant 0 : index
    %87 = vector.load %arg24[%c0_65, %c0_66] : memref<8x128xf32, #tpu.memory_space<vmem>>, vector<8x128xf32>
    tpu.vector_store %arg24[%c0_65, %c0_66], %86 {strides = array<i32>} : memref<8x128xf32, #tpu.memory_space<vmem>>, vector<8x128xf32>,
    return
  }
  func.func @transform_0(%arg0: i32) -> (i32, i32) {
    %c0_i32 = arith.constant 0 : i32
    %c0_i32_0 = arith.constant 0 : i32
    return %arg0, %c0_i32 : i32, i32
  }
  func.func @transform_1(%arg0: i32) -> (i32, i32) {
    %c0_i32 = arith.constant 0 : i32
    %c0_i32_0 = arith.constant 0 : i32
    %c0_i32_1 = arith.constant 0 : i32
    return %c0_i32, %c0_i32_0 : i32, i32
  }
  func.func @transform_2(%arg0: i32) -> (i32, i32) {
    %c0_i32 = arith.constant 0 : i32
    %c0_i32_0 = arith.constant 0 : i32
    %c0_i32_1 = arith.constant 0 : i32
    return %c0_i32, %c0_i32_0 : i32, i32
  }
  func.func @transform_3(%arg0: i32) -> (i32, i32) {
    %c0_i32 = arith.constant 0 : i32
    %c0_i32_0 = arith.constant 0 : i32
    %c0_i32_1 = arith.constant 0 : i32
    return %c0_i32, %c0_i32_0 : i32, i32
  }
  func.func @transform_4(%arg0: i32) -> (i32, i32) {
    %c0_i32 = arith.constant 0 : i32
    %c0_i32_0 = arith.constant 0 : i32
    %c0_i32_1 = arith.constant 0 : i32
    return %c0_i32, %c0_i32_0 : i32, i32
  }
  func.func @transform_5(%arg0: i32) -> (i32, i32) {
    %c0_i32 = arith.constant 0 : i32
    %c0_i32_0 = arith.constant 0 : i32
    %c0_i32_1 = arith.constant 0 : i32
    return %c0_i32, %c0_i32_0 : i32, i32
  }
  func.func @transform_6(%arg0: i32) -> (i32, i32) {
    %c0_i32 = arith.constant 0 : i32
    %c0_i32_0 = arith.constant 0 : i32
    %c0_i32_1 = arith.constant 0 : i32
    return %c0_i32, %c0_i32_0 : i32, i32
  }
  func.func @transform_7(%arg0: i32) -> (i32, i32) {
    %c0_i32 = arith.constant 0 : i32
    %c0_i32_0 = arith.constant 0 : i32
    %c0_i32_1 = arith.constant 0 : i32
    return %c0_i32, %c0_i32_0 : i32, i32
  }
  func.func @transform_8(%arg0: i32) -> (i32, i32) {
    %c0_i32 = arith.constant 0 : i32
    %c0_i32_0 = arith.constant 0 : i32
    %c0_i32_1 = arith.constant 0 : i32
    return %c0_i32, %c0_i32_0 : i32, i32
  }
  func.func @transform_9(%arg0: i32) -> (i32, i32) {
    %c0_i32 = arith.constant 0 : i32
    %c0_i32_0 = arith.constant 0 : i32
    %c0_i32_1 = arith.constant 0 : i32
    return %c0_i32, %c0_i32_0 : i32, i32
  }
  func.func @transform_10(%arg0: i32) -> (i32, i32) {
    %c0_i32 = arith.constant 0 : i32
    %c0_i32_0 = arith.constant 0 : i32
    %c0_i32_1 = arith.constant 0 : i32
    return %c0_i32, %c0_i32_0 : i32, i32
  }
  func.func @transform_11(%arg0: i32) -> (i32, i32) {
    %c0_i32 = arith.constant 0 : i32
    %c0_i32_0 = arith.constant 0 : i32
    %c0_i32_1 = arith.constant 0 : i32
    return %c0_i32, %c0_i32_0 : i32, i32
  }
  func.func @transform_12(%arg0: i32) -> (i32, i32) {
    %c0_i32 = arith.constant 0 : i32
    %c0_i32_0 = arith.constant 0 : i32
    %c0_i32_1 = arith.constant 0 : i32
    return %c0_i32, %c0_i32_0 : i32, i32
  }
  func.func @transform_13(%arg0: i32) -> (i32, i32) {
    %c0_i32 = arith.constant 0 : i32
    %c0_i32_0 = arith.constant 0 : i32
    %c0_i32_1 = arith.constant 0 : i32
    return %c0_i32, %c0_i32_0 : i32, i32
  }
  func.func @transform_14(%arg0: i32) -> (i32, i32) {
    %c0_i32 = arith.constant 0 : i32
    %c0_i32_0 = arith.constant 0 : i32
    %c0_i32_1 = arith.constant 0 : i32
    return %c0_i32, %c0_i32_0 : i32, i32
  }
  func.func @transform_15(%arg0: i32) -> (i32, i32) {
    %c0_i32 = arith.constant 0 : i32
    %c0_i32_0 = arith.constant 0 : i32
    %c0_i32_1 = arith.constant 0 : i32
    return %c0_i32, %c0_i32_0 : i32, i32
  }
  func.func @transform_16(%arg0: i32) -> (i32, i32) {
    %c0_i32 = arith.constant 0 : i32
    %c0_i32_0 = arith.constant 0 : i32
    %c0_i32_1 = arith.constant 0 : i32
    return %c0_i32, %c0_i32_0 : i32, i32
  }
  func.func @transform_17(%arg0: i32) -> (i32, i32) {
    %c0_i32 = arith.constant 0 : i32
    %c0_i32_0 = arith.constant 0 : i32
    %c0_i32_1 = arith.constant 0 : i32
    return %c0_i32, %c0_i32_0 : i32, i32
  }
  func.func @transform_18(%arg0: i32) -> (i32, i32) {
    %c0_i32 = arith.constant 0 : i32
    %c0_i32_0 = arith.constant 0 : i32
    %c0_i32_1 = arith.constant 0 : i32
    return %c0_i32, %c0_i32_0 : i32, i32
  }
  func.func @transform_19(%arg0: i32) -> (i32, i32) {
    %c0_i32 = arith.constant 0 : i32
    %c0_i32_0 = arith.constant 0 : i32
    %c0_i32_1 = arith.constant 0 : i32
    return %c0_i32, %c0_i32_0 : i32, i32
  }
  func.func @transform_20(%arg0: i32) -> (i32, i32) {
    %c0_i32 = arith.constant 0 : i32
    %c0_i32_0 = arith.constant 0 : i32
    %c0_i32_1 = arith.constant 0 : i32
    return %c0_i32, %c0_i32_0 : i32, i32
  }
  func.func @transform_21(%arg0: i32) -> (i32, i32) {
    %c0_i32 = arith.constant 0 : i32
    %c0_i32_0 = arith.constant 0 : i32
    %c0_i32_1 = arith.constant 0 : i32
    return %c0_i32, %c0_i32_0 : i32, i32
  }
  func.func @transform_22(%arg0: i32) -> (i32, i32) {
    %c0_i32 = arith.constant 0 : i32
    %c0_i32_0 = arith.constant 0 : i32
    %c0_i32_1 = arith.constant 0 : i32
    return %c0_i32, %c0_i32_0 : i32, i32
  }
  func.func @transform_23(%arg0: i32) -> (i32, i32) {
    %c0_i32 = arith.constant 0 : i32
    %c0_i32_0 = arith.constant 0 : i32
    return %arg0, %c0_i32 : i32, i32
  }
}

</mosaic_0001>

<bundles_post_ra>
// kernel: mlp_forward.1
= control target key start
LH: loop header
LB: loop body
LE: loop exit
PB: predicated region body
PF: predicated region fallthrough
CT: control target
= control target key end

     0   :  { %s5635_s0 = inlined_call_operand.hbm [shape: f32[8,32], index: 0, kind: input, shape index: {}]   ;;  %s5636_s1 = inlined_call_operand.hbm [shape: bf16[32,64], index: 1, kind: input, shape index: {}]   ;;  %s5637_s2 = inlined_call_operand.hbm [shape: f32[1,64], index: 2, kind: input, shape index: {}]   ;;  %s5638_s3 = inlined_call_operand.vmem [shape: bf16[64,128], index: 3, kind: input, shape index: {}]   ;;  %s5639_s4 = inlined_call_operand.hbm [shape: f32[1,128], index: 4, kind: input, shape index: {}]   ;;  %s5640_s5 = inlined_call_operand.hbm [shape: bf16[128,256], index: 5, kind: input, shape index: {}]   ;;  %s5641_s6 = inlined_call_operand.hbm [shape: f32[1,256], index: 6, kind: input, shape index: {}]   ;;  %s5642_s7 = inlined_call_operand.hbm [shape: bf16[256,256], index: 7, kind: input, shape index: {}]   ;;  %s5643_s8 = inlined_call_operand.hbm [shape: f32[1,256], index: 8, kind: input, shape index: {}]   ;;  %s5644_s9 = inlined_call_operand.hbm [shape: bf16[256,512], index: 9, kind: input, shape index: {}]   ;;  %s5645_s10 = inlined_call_operand.hbm [shape: f32[1,512], index: 10, kind: input, shape index: {}]   ;;  %s5646_s11 = inlined_call_operand.hbm [shape: bf16[512,512], index: 11, kind: input, shape index: {}]   ;;  %s5647_s12 = inlined_call_operand.hbm [shape: f32[1,512], index: 12, kind: input, shape index: {}]   ;;  %s5648_s13 = inlined_call_operand.hbm [shape: bf16[512,256], index: 13, kind: input, shape index: {}]   ;;  %s5649_s14 = inlined_call_operand.hbm [shape: f32[1,256], index: 14, kind: input, shape index: {}]   ;;  %s5650_s15 = inlined_call_operand.hbm [shape: bf16[256,256], index: 15, kind: input, shape index: {}]   ;;  %s5651_s16 = inlined_call_operand.hbm [shape: f32[1,256], index: 16, kind: input, shape index: {}]   ;;  %s5652_s17 = inlined_call_operand.vmem [shape: bf16[256,128], index: 17, kind: input, shape index: {}]   ;;  %s5653_s18 = inlined_call_operand.vmem [shape: f32[1,128], index: 18, kind: input, shape index: {}]   ;;  %s5654_s19 = inlined_call_operand.vmem [shape: bf16[128,64], index: 19, kind: input, shape index: {}]   ;;  %s5655_s20 = inlined_call_operand.vmem [shape: f32[1,64], index: 20, kind: input, shape index: {}]   ;;  %s5656_s21 = inlined_call_operand.hbm [shape: bf16[64,128], index: 21, kind: input, shape index: {}]   ;;  %s5657_s22 = inlined_call_operand.vmem [shape: f32[1,128], index: 22, kind: input, shape index: {}]   ;;  %s5658_s23 = inlined_call_operand.vmem [shape: f32[8,128], index: 23, kind: output, shape index: {}]  }
   0x1   :  { %5667 = sst [smem:[#allocation37_spill]] %s5635_s0 }
   0x2   :  { %5668 = sst [smem:[#allocation38_spill]] %s5636_s1 }
   0x3   :  { %5669 = sst [smem:[#allocation39_spill]] %s5637_s2 }
   0x4   :  { %5670 = sst [smem:[#allocation40_spill]] %s5638_s3 }
   0x5   :  { %5671 = sst [smem:[#allocation41_spill]] %s5639_s4 }
   0x6   :  { %5672 = sst [smem:[#allocation42_spill]] %s5640_s5 }
   0x7   :  { %5673 = sst [smem:[#allocation43_spill]] %s5641_s6 }
   0x8   :  { %5674 = sst [smem:[#allocation44_spill]] %s5642_s7 }
   0x9   :  { %5675 = sst [smem:[#allocation45_spill]] %s5655_s20 }
   0xa   :  { %5676 = sst [smem:[#allocation46_spill]] %s5657_s22 }
   0xb   :  { %5677 = sst [smem:[#allocation47_spill]] %s5658_s23 }
   0xc   :  { %28 = vsyncpa [#allocation3], 0 }
   0xd   :  { %29 = vsyncpa [#allocation5], 0 }
   0xe   :  { %30 = vsyncpa [#allocation8], 0 }
   0xf   :  { %31 = vsyncpa [#allocation11], 0 }
  0x10   :  { %32 = vsyncpa [#allocation14], 0 }
  0x11   :  { %33 = vsyncpa [#allocation17], 0 }
  0x12   :  { %34 = vsyncpa [#allocation20], 0 }
  0x13   :  { %35 = vsyncpa [#allocation23], 0 }
  0x14   :  { %36 = vsyncpa [#allocation26], 0  ;;  %s5094_s4 = smov [#allocation4]   ;;  %s5678_s5 = sld [smem:[#allocation38_spill]] }
  0x15   :  { %s52_s30 = sshll.u32 %s5094_s4, 4  ;;  %s53_s30 = int_to_ptr.vmem [resolvable:$true] %s52_s30 }
  0x1a   :  { %s4702_s1 = scalar_lea.hbm %s5678_s5, 256 }
  0x1b   :  { %p4703_p0 = scmp.ne.s32.totalorder %s5678_s5, %s4702_s1  ;;  %p4706_p1 = scmp.lt.u32.totalorder %s4702_s1, %s5678_s5 }
  0x1d   :  { %p4708_p2 = pnand %p4706_p1, %p4703_p0 }
  0x1f   :  { %4711 = shalt.err (!%p4708_p2)
}
  0x20   :  { %s4712_s7 = scalar_lea.vmem %s53_s30, 256  ;;  %p4717_p4 = scmp.lt.s32.totalorder %s53_s30, %s53_s30 }
  0x21   :  { %p4713_p3 = scmp.ne.s32.totalorder %s53_s30, %s4712_s7  ;;  %p4718_p5 = scmp.lt.s32.totalorder %s4712_s7, %s4712_s7 }
  0x23   :  { %p4719_p6 = por %p4718_p5, %p4717_p4 }
  0x25   :  { %p4720_p7 = pnand %p4719_p6, %p4713_p3 }
  0x27   :  { %4723 = shalt.err (!%p4720_p7)
}
  0x28   :  { %s5095_s28 = smov 64   ;;  %s5096_s29 = smov 4  }
  0x29   :  { %58 = dma.hbm_to_vmem [thread:$0]  %s5678_s5, 256, %s53_s30, [#allocation5], %s5095_s28, %s5095_s28, %s5096_s29  }
  0x2a   :  { %s5097_s4 = smov [#allocation7]   ;;  %s5098_s25 = smov [#allocation10]  }
  0x2b   :  { %s77_s24 = sshll.u32 %s5097_s4, 4  ;;  %s99_s1 = sshll.u32 %s5098_s25, 4  ;;  %s78_s24 = int_to_ptr.vmem [resolvable:$true] %s77_s24  ;;  %s100_s1 = int_to_ptr.vmem [resolvable:$true] %s99_s1 }
  0x2c   :  { %s5679_s6 = sld [smem:[#allocation41_spill]] }
  0x32   :  { %s4724_s27 = scalar_lea.hbm %s5679_s6, 16 }
  0x33   :  { %p4725_p8 = scmp.ne.s32.totalorder %s5679_s6, %s4724_s27  ;;  %p4728_p9 = scmp.lt.u32.totalorder %s4724_s27, %s5679_s6 }
  0x35   :  { %p4730_p10 = pnand %p4728_p9, %p4725_p8 }
  0x37   :  { %4733 = shalt.err (!%p4730_p10)
}
  0x38   :  { %s4734_s30 = scalar_lea.vmem %s78_s24, 16  ;;  %s4738_s5 = scalar_lea.vmem %s78_s24, 32 }
  0x39   :  { %p4735_p11 = scmp.ne.s32.totalorder %s78_s24, %s4734_s30  ;;  %p4739_p12 = scmp.lt.s32.totalorder %s78_s24, %s78_s24 }
  0x3a   :  { %p4740_p13 = scmp.lt.s32.totalorder %s4738_s5, %s4734_s30 }
  0x3c   :  { %p4741_p0 = por %p4740_p13, %p4739_p12 }
  0x3e   :  { %p4742_p1 = pnand %p4741_p0, %p4735_p11 }
  0x40   :  { %4745 = shalt.err (!%p4742_p1)
}
  0x41   :  { %80 = dma.hbm_to_vmem [thread:$0]  %s5679_s6, 16, %s78_s24, [#allocation8]  }
  0x42   :  { %s5680_s25 = sld [smem:[#allocation43_spill]] }
  0x48   :  { %s4746_s20 = scalar_lea.hbm %s5680_s25, 32 }
  0x49   :  { %p4747_p2 = scmp.ne.s32.totalorder %s5680_s25, %s4746_s20  ;;  %p4750_p3 = scmp.lt.u32.totalorder %s4746_s20, %s5680_s25 }
  0x4b   :  { %p4752_p4 = pnand %p4750_p3, %p4747_p2 }
  0x4d   :  { %4755 = shalt.err (!%p4752_p4)
}
  0x4e   :  { %s4756_s7 = scalar_lea.vmem %s100_s1, 32  ;;  %p4761_p6 = scmp.lt.s32.totalorder %s100_s1, %s100_s1 }
  0x4f   :  { %p4757_p5 = scmp.ne.s32.totalorder %s100_s1, %s4756_s7  ;;  %p4762_p7 = scmp.lt.s32.totalorder %s4756_s7, %s4756_s7 }
  0x51   :  { %p4763_p8 = por %p4762_p7, %p4761_p6 }
  0x53   :  { %p4764_p9 = pnand %p4763_p8, %p4757_p5 }
  0x55   :  { %4767 = shalt.err (!%p4764_p9)
}
  0x56   :  { %102 = dma.hbm_to_vmem [thread:$0]  %s5680_s25, 32, %s100_s1, [#allocation11]  }
  0x57   :  { %s5099_s30 = smov [#allocation13]   ;;  %s5100_s3 = smov [#allocation16]  }
  0x58   :  { %s121_s5 = sshll.u32 %s5099_s30, 4  ;;  %s143_s0 = sshll.u32 %s5100_s3, 4  ;;  %s122_s5 = int_to_ptr.vmem [resolvable:$true] %s121_s5  ;;  %s144_s0 = int_to_ptr.vmem [resolvable:$true] %s143_s0 }
  0x59   :  { %s4768_s20 = scalar_lea.hbm %s5643_s8, 32 }
  0x5a   :  { %p4769_p10 = scmp.ne.s32.totalorder %s5643_s8, %s4768_s20  ;;  %p4772_p11 = scmp.lt.u32.totalorder %s4768_s20, %s5643_s8 }
  0x5c   :  { %p4774_p12 = pnand %p4772_p11, %p4769_p10 }
  0x5e   :  { %4777 = shalt.err (!%p4774_p12)
}
  0x5f   :  { %s4778_s1 = scalar_lea.vmem %s122_s5, 32  ;;  %p4783_p0 = scmp.lt.s32.totalorder %s122_s5, %s122_s5 }
  0x60   :  { %p4779_p13 = scmp.ne.s32.totalorder %s122_s5, %s4778_s1  ;;  %p4784_p1 = scmp.lt.s32.totalorder %s4778_s1, %s4778_s1 }
  0x62   :  { %p4785_p2 = por %p4784_p1, %p4783_p0 }
  0x64   :  { %p4786_p3 = pnand %p4785_p2, %p4779_p13 }
  0x66   :  { %4789 = shalt.err (!%p4786_p3)
}
  0x67   :  { %124 = dma.hbm_to_vmem [thread:$0]  %s5643_s8, 32, %s122_s5, [#allocation14]  }
  0x68   :  { %s4790_s30 = scalar_lea.hbm %s5645_s10, 64 }
  0x69   :  { %p4791_p4 = scmp.ne.s32.totalorder %s5645_s10, %s4790_s30  ;;  %p4794_p5 = scmp.lt.u32.totalorder %s4790_s30, %s5645_s10 }
  0x6b   :  { %p4796_p6 = pnand %p4794_p5, %p4791_p4 }
  0x6d   :  { %4799 = shalt.err (!%p4796_p6)
}
  0x6e   :  { %s4800_s22 = scalar_lea.vmem %s144_s0, 64  ;;  %p4805_p8 = scmp.lt.s32.totalorder %s144_s0, %s144_s0 }
  0x6f   :  { %p4801_p7 = scmp.ne.s32.totalorder %s144_s0, %s4800_s22  ;;  %p4806_p9 = scmp.lt.s32.totalorder %s4800_s22, %s4800_s22 }
  0x71   :  { %p4807_p10 = por %p4806_p9, %p4805_p8 }
  0x73   :  { %p4808_p11 = pnand %p4807_p10, %p4801_p7 }
  0x75   :  { %4811 = shalt.err (!%p4808_p11)
}
  0x76   :  { %146 = dma.hbm_to_vmem [thread:$0]  %s5645_s10, 64, %s144_s0, [#allocation17]  }
  0x77   :  { %s5101_s26 = smov [#allocation19]   ;;  %s5102_s27 = smov [#allocation22]  }
  0x78   :  { %s165_s2 = sshll.u32 %s5101_s26, 4  ;;  %s187_s1 = sshll.u32 %s5102_s27, 4  ;;  %s166_s2 = int_to_ptr.vmem [resolvable:$true] %s165_s2  ;;  %s188_s1 = int_to_ptr.vmem [resolvable:$true] %s187_s1 }
  0x79   :  { %s4812_s24 = scalar_lea.hbm %s5647_s12, 64 }
  0x7a   :  { %p4813_p12 = scmp.ne.s32.totalorder %s5647_s12, %s4812_s24  ;;  %p4816_p13 = scmp.lt.u32.totalorder %s4812_s24, %s5647_s12 }
  0x7c   :  { %p4818_p0 = pnand %p4816_p13, %p4813_p12 }
  0x7e   :  { %4821 = shalt.err (!%p4818_p0)
}
  0x7f   :  { %s4822_s10 = scalar_lea.vmem %s166_s2, 64  ;;  %p4827_p2 = scmp.lt.s32.totalorder %s166_s2, %s166_s2 }
  0x80   :  { %p4823_p1 = scmp.ne.s32.totalorder %s166_s2, %s4822_s10  ;;  %p4828_p3 = scmp.lt.s32.totalorder %s4822_s10, %s4822_s10 }
  0x82   :  { %p4829_p4 = por %p4828_p3, %p4827_p2 }
  0x84   :  { %p4830_p5 = pnand %p4829_p4, %p4823_p1 }
  0x86   :  { %4833 = shalt.err (!%p4830_p5)
}
  0x87   :  { %168 = dma.hbm_to_vmem [thread:$0]  %s5647_s12, 64, %s166_s2, [#allocation20]  }
  0x88   :  { %s4834_s8 = scalar_lea.hbm %s5649_s14, 32 }
  0x89   :  { %p4835_p6 = scmp.ne.s32.totalorder %s5649_s14, %s4834_s8  ;;  %p4838_p7 = scmp.lt.u32.totalorder %s4834_s8, %s5649_s14 }
  0x8b   :  { %p4840_p8 = pnand %p4838_p7, %p4835_p6 }
  0x8d   :  { %4843 = shalt.err (!%p4840_p8)
}
  0x8e   :  { %s4844_s7 = scalar_lea.vmem %s188_s1, 32  ;;  %p4849_p10 = scmp.lt.s32.totalorder %s188_s1, %s188_s1 }
  0x8f   :  { %p4845_p9 = scmp.ne.s32.totalorder %s188_s1, %s4844_s7  ;;  %p4850_p11 = scmp.lt.s32.totalorder %s4844_s7, %s4844_s7 }
  0x91   :  { %p4851_p12 = por %p4850_p11, %p4849_p10 }
  0x93   :  { %p4852_p13 = pnand %p4851_p12, %p4845_p9 }
  0x95   :  { %4855 = shalt.err (!%p4852_p13)
}
  0x96   :  { %190 = dma.hbm_to_vmem [thread:$0]  %s5649_s14, 32, %s188_s1, [#allocation23]  }
  0x97   :  { %s5103_s24 = smov [#allocation25]   ;;  %s5104_s30 = smov [#allocation2]  }
  0x98   :  { %s209_s6 = sshll.u32 %s5103_s24, 4  ;;  %s43_s3 = sshll.u32 %s5104_s30, 4  ;;  %s210_s6 = int_to_ptr.vmem [resolvable:$true] %s209_s6  ;;  %s44_s3 = int_to_ptr.vmem [resolvable:$true] %s43_s3 }
  0x99   :  { %s4856_s0 = scalar_lea.hbm %s5651_s16, 32 }
  0x9a   :  { %p4857_p0 = scmp.ne.s32.totalorder %s5651_s16, %s4856_s0  ;;  %p4860_p1 = scmp.lt.u32.totalorder %s4856_s0, %s5651_s16 }
  0x9c   :  { %p4862_p2 = pnand %p4860_p1, %p4857_p0 }
  0x9e   :  { %4865 = shalt.err (!%p4862_p2)
}
  0x9f   :  { %s4866_s14 = scalar_lea.vmem %s210_s6, 32  ;;  %p4871_p4 = scmp.lt.s32.totalorder %s210_s6, %s210_s6 }
  0xa0   :  { %p4867_p3 = scmp.ne.s32.totalorder %s210_s6, %s4866_s14  ;;  %p4872_p5 = scmp.lt.s32.totalorder %s4866_s14, %s4866_s14 }
  0xa2   :  { %p4873_p6 = por %p4872_p5, %p4871_p4 }
  0xa4   :  { %p4874_p7 = pnand %p4873_p6, %p4867_p3 }
  0xa6   :  { %4877 = shalt.err (!%p4874_p7)
}
  0xa7   :  { %212 = dma.hbm_to_vmem [thread:$0]  %s5651_s16, 32, %s210_s6, [#allocation26]  }
  0xa8   :  { %s5681_s25 = sld [smem:[#allocation37_spill]] }
  0xae   :  { %s4878_s7 = scalar_lea.hbm %s5681_s25, 128 }
  0xaf   :  { %p4879_p8 = scmp.ne.s32.totalorder %s5681_s25, %s4878_s7  ;;  %p4882_p9 = scmp.lt.u32.totalorder %s4878_s7, %s5681_s25 }
  0xb1   :  { %p4884_p10 = pnand %p4882_p9, %p4879_p8 }
  0xb3   :  { %4887 = shalt.err (!%p4884_p10)
}
  0xb4   :  { %s4888_s23 = scalar_lea.vmem %s44_s3, 128  ;;  %p4893_p12 = scmp.lt.s32.totalorder %s44_s3, %s44_s3 }
  0xb5   :  { %p4889_p11 = scmp.ne.s32.totalorder %s44_s3, %s4888_s23  ;;  %p4894_p13 = scmp.lt.s32.totalorder %s4888_s23, %s4888_s23 }
  0xb7   :  { %p4895_p0 = por %p4894_p13, %p4893_p12 }
  0xb9   :  { %p4896_p1 = pnand %p4895_p0, %p4889_p11 }
  0xbb   :  { %4899 = shalt.err (!%p4896_p1)
}
  0xbc   :  { %46 = dma.hbm_to_vmem [thread:$0]  %s5681_s25, 128, %s44_s3, [#allocation3]  }
  0xbd   :  { %s5105_s10 = smov [#allocation6]   ;;  %s5106_s4 = smov [#allocation9]  }
  0xbe   :  { %s65_s0 = sshll.u32 %s5105_s10, 4  ;;  %s86_s20 = sshll.u32 %s5106_s4, 4  ;;  %s66_s0 = int_to_ptr.vmem [resolvable:$true] %s65_s0  ;;  %s87_s20 = int_to_ptr.vmem [resolvable:$true] %s86_s20 }
  0xbf   :  { %s5682_s14 = sld [smem:[#allocation39_spill]] }
  0xc5   :  { %s4900_s1 = scalar_lea.hbm %s5682_s14, 16 }
  0xc6   :  { %p4901_p2 = scmp.ne.s32.totalorder %s5682_s14, %s4900_s1  ;;  %p4904_p3 = scmp.lt.u32.totalorder %s4900_s1, %s5682_s14 }
  0xc8   :  { %p4906_p4 = pnand %p4904_p3, %p4901_p2 }
  0xca   :  { %4909 = shalt.err (!%p4906_p4)
}
  0xcb   :  { %s4910_s3 = scalar_lea.vmem %s66_s0, 16  ;;  %s4914_s25 = scalar_lea.vmem %s66_s0, 32 }
  0xcc   :  { %p4911_p5 = scmp.ne.s32.totalorder %s66_s0, %s4910_s3  ;;  %p4915_p6 = scmp.lt.s32.totalorder %s66_s0, %s66_s0 }
  0xcd   :  { %p4916_p7 = scmp.lt.s32.totalorder %s4914_s25, %s4910_s3 }
  0xcf   :  { %p4917_p8 = por %p4916_p7, %p4915_p6 }
  0xd1   :  { %p4918_p9 = pnand %p4917_p8, %p4911_p5 }
  0xd3   :  { %4921 = shalt.err (!%p4918_p9)
}
  0xd4   :  { %68 = dma.hbm_to_vmem [thread:$0]  %s5682_s14, 16, %s66_s0, [#allocation5]  }
  0xd5   :  { %s5683_s23 = sld [smem:[#allocation42_spill]] }
  0xdb   :  { %s4922_s16 = scalar_lea.hbm %s5683_s23, 2048 }
  0xdc   :  { %p4923_p10 = scmp.ne.s32.totalorder %s5683_s23, %s4922_s16  ;;  %p4926_p11 = scmp.lt.u32.totalorder %s4922_s16, %s5683_s23 }
  0xde   :  { %p4928_p12 = pnand %p4926_p11, %p4923_p10 }
  0xe0   :  { %4931 = shalt.err (!%p4928_p12)
}
  0xe1   :  { %s4932_s8 = scalar_lea.vmem %s87_s20, 2048  ;;  %p4937_p0 = scmp.lt.s32.totalorder %s87_s20, %s87_s20 }
  0xe2   :  { %p4933_p13 = scmp.ne.s32.totalorder %s87_s20, %s4932_s8  ;;  %p4938_p1 = scmp.lt.s32.totalorder %s4932_s8, %s4932_s8 }
  0xe4   :  { %p4939_p2 = por %p4938_p1, %p4937_p0 }
  0xe6   :  { %p4940_p3 = pnand %p4939_p2, %p4933_p13 }
  0xe8   :  { %4943 = shalt.err (!%p4940_p3)
}
  0xe9   :  { %s5107_s0 = smov 128   ;;  %s5108_s14 = smov 8  }
  0xea   :  { %92 = dma.hbm_to_vmem [thread:$0]  %s5683_s23, 2048, %s87_s20, [#allocation8], %s5107_s0, %s5107_s0, %s5108_s14  }
  0xeb   :  { %s5109_s26 = smov [#allocation12]   ;;  %s5110_s7 = smov [#allocation15]  }
  0xec   :  { %s108_s27 = sshll.u32 %s5109_s26, 4  ;;  %s130_s3 = sshll.u32 %s5110_s7, 4  ;;  %s109_s27 = int_to_ptr.vmem [resolvable:$true] %s108_s27  ;;  %s131_s3 = int_to_ptr.vmem [resolvable:$true] %s130_s3 }
  0xed   :  { %s5684_s2 = sld [smem:[#allocation44_spill]] }
  0xf3   :  { %s4944_s24 = scalar_lea.hbm %s5684_s2, 4096 }
  0xf4   :  { %p4945_p4 = scmp.ne.s32.totalorder %s5684_s2, %s4944_s24  ;;  %p4948_p5 = scmp.lt.u32.totalorder %s4944_s24, %s5684_s2 }
  0xf6   :  { %p4950_p6 = pnand %p4948_p5, %p4945_p4 }
  0xf8   :  { %4953 = shalt.err (!%p4950_p6)
}
  0xf9   :  { %s4954_s20 = scalar_lea.vmem %s109_s27, 4096  ;;  %p4959_p8 = scmp.lt.s32.totalorder %s109_s27, %s109_s27 }
  0xfa   :  { %p4955_p7 = scmp.ne.s32.totalorder %s109_s27, %s4954_s20  ;;  %p4960_p9 = scmp.lt.s32.totalorder %s4954_s20, %s4954_s20 }
  0xfc   :  { %p4961_p10 = por %p4960_p9, %p4959_p8 }
  0xfe   :  { %p4962_p11 = pnand %p4961_p10, %p4955_p7 }
 0x100   :  { %4965 = shalt.err (!%p4962_p11)
}
 0x101   :  { %114 = dma.hbm_to_vmem [thread:$0]  %s5684_s2, 4096, %s109_s27, [#allocation11], %s5107_s0, %s5107_s0, %s5108_s14  }
 0x102   :  { %s4966_s1 = scalar_lea.hbm %s5644_s9, 8192 }
 0x103   :  { %p4967_p12 = scmp.ne.s32.totalorder %s5644_s9, %s4966_s1  ;;  %p4970_p13 = scmp.lt.u32.totalorder %s4966_s1, %s5644_s9 }
 0x105   :  { %p4972_p0 = pnand %p4970_p13, %p4967_p12 }
 0x107   :  { %4975 = shalt.err (!%p4972_p0)
}
 0x108   :  { %s4976_s12 = scalar_lea.vmem %s131_s3, 8192  ;;  %p4981_p2 = scmp.lt.s32.totalorder %s131_s3, %s131_s3 }
 0x109   :  { %p4977_p1 = scmp.ne.s32.totalorder %s131_s3, %s4976_s12  ;;  %p4982_p3 = scmp.lt.s32.totalorder %s4976_s12, %s4976_s12 }
 0x10b   :  { %p4983_p4 = por %p4982_p3, %p4981_p2 }
 0x10d   :  { %p4984_p5 = pnand %p4983_p4, %p4977_p1 }
 0x10f   :  { %4987 = shalt.err (!%p4984_p5)
}
 0x110   :  { %s5111_s27 = smov 256   ;;  %s5112_s2 = smov 16  }
 0x111   :  { %136 = dma.hbm_to_vmem [thread:$0]  %s5644_s9, 8192, %s131_s3, [#allocation14], %s5111_s27, %s5111_s27, %s5112_s2  }
 0x112   :  { %s5113_s16 = smov [#allocation18]   ;;  %s5114_s10 = smov [#allocation21]  }
 0x113   :  { %s152_s6 = sshll.u32 %s5113_s16, 4  ;;  %s174_s20 = sshll.u32 %s5114_s10, 4  ;;  %s153_s6 = int_to_ptr.vmem [resolvable:$true] %s152_s6  ;;  %s175_s20 = int_to_ptr.vmem [resolvable:$true] %s174_s20 }
 0x114   :  { %s4988_s22 = scalar_lea.hbm %s5646_s11, 16384 }
 0x115   :  { %p4989_p6 = scmp.ne.s32.totalorder %s5646_s11, %s4988_s22  ;;  %p4992_p7 = scmp.lt.u32.totalorder %s4988_s22, %s5646_s11 }
 0x117   :  { %p4994_p8 = pnand %p4992_p7, %p4989_p6 }
 0x119   :  { %4997 = shalt.err (!%p4994_p8)
}
 0x11a   :  { %s4998_s9 = scalar_lea.vmem %s153_s6, 16384  ;;  %p5003_p10 = scmp.lt.s32.totalorder %s153_s6, %s153_s6 }
 0x11b   :  { %p4999_p9 = scmp.ne.s32.totalorder %s153_s6, %s4998_s9  ;;  %p5004_p11 = scmp.lt.s32.totalorder %s4998_s9, %s4998_s9 }
 0x11d   :  { %p5005_p12 = por %p5004_p11, %p5003_p10 }
 0x11f   :  { %p5006_p13 = pnand %p5005_p12, %p4999_p9 }
 0x121   :  { %5009 = shalt.err (!%p5006_p13)
}
 0x122   :  { %158 = dma.hbm_to_vmem [thread:$0]  %s5646_s11, 16384, %s153_s6, [#allocation17], %s5111_s27, %s5111_s27, %s5112_s2  }
 0x123   :  { %s5010_s24 = scalar_lea.hbm %s5648_s13, 8192 }
 0x124   :  { %p5011_p0 = scmp.ne.s32.totalorder %s5648_s13, %s5010_s24  ;;  %p5014_p1 = scmp.lt.u32.totalorder %s5010_s24, %s5648_s13 }
 0x126   :  { %p5016_p2 = pnand %p5014_p1, %p5011_p0 }
 0x128   :  { %5019 = shalt.err (!%p5016_p2)
}
 0x129   :  { %s5020_s4 = scalar_lea.vmem %s175_s20, 8192  ;;  %p5025_p4 = scmp.lt.s32.totalorder %s175_s20, %s175_s20 }
 0x12a   :  { %p5021_p3 = scmp.ne.s32.totalorder %s175_s20, %s5020_s4  ;;  %p5026_p5 = scmp.lt.s32.totalorder %s5020_s4, %s5020_s4 }
 0x12c   :  { %p5027_p6 = por %p5026_p5, %p5025_p4 }
 0x12e   :  { %p5028_p7 = pnand %p5027_p6, %p5021_p3 }
 0x130   :  { %5031 = shalt.err (!%p5028_p7)
}
 0x131   :  { %180 = dma.hbm_to_vmem [thread:$0]  %s5648_s13, 8192, %s175_s20, [#allocation20], %s5107_s0, %s5107_s0, %s5108_s14  }
 0x132   :  { %s5115_s2 = smov [#allocation24]   ;;  %s5116_s22 = smov [#allocation27]  }
 0x133   :  { %s196_s6 = sshll.u32 %s5115_s2, 4  ;;  %s226_s8 = sshll.u32 %s5116_s22, 4  ;;  %s197_s6 = int_to_ptr.vmem [resolvable:$true] %s196_s6  ;;  %s227_s8 = int_to_ptr.vmem [resolvable:$true] %s226_s8 }
 0x134   :  { %s5032_s26 = scalar_lea.hbm %s5650_s15, 4096 }
 0x135   :  { %p5033_p8 = scmp.ne.s32.totalorder %s5650_s15, %s5032_s26  ;;  %p5036_p9 = scmp.lt.u32.totalorder %s5032_s26, %s5650_s15 }
 0x137   :  { %p5038_p10 = pnand %p5036_p9, %p5033_p8 }
 0x139   :  { %5041 = shalt.err (!%p5038_p10)
}
 0x13a   :  { %s5042_s13 = scalar_lea.vmem %s197_s6, 4096  ;;  %p5047_p12 = scmp.lt.s32.totalorder %s197_s6, %s197_s6 }
 0x13b   :  { %p5043_p11 = scmp.ne.s32.totalorder %s197_s6, %s5042_s13  ;;  %p5048_p13 = scmp.lt.s32.totalorder %s5042_s13, %s5042_s13 }
 0x13d   :  { %p5049_p0 = por %p5048_p13, %p5047_p12 }
 0x13f   :  { %p5050_p1 = pnand %p5049_p0, %p5043_p11 }
 0x141   :  { %5053 = shalt.err (!%p5050_p1)
}
 0x142   :  { %202 = dma.hbm_to_vmem [thread:$0]  %s5650_s15, 4096, %s197_s6, [#allocation23], %s5107_s0, %s5107_s0, %s5108_s14  }
 0x143   :  { %s5054_s16 = scalar_lea.hbm %s5656_s21, 512 }
 0x144   :  { %p5055_p2 = scmp.ne.s32.totalorder %s5656_s21, %s5054_s16  ;;  %p5058_p3 = scmp.lt.u32.totalorder %s5054_s16, %s5656_s21 }
 0x146   :  { %p5060_p4 = pnand %p5058_p3, %p5055_p2 }
 0x148   :  { %5063 = shalt.err (!%p5060_p4)
}
 0x149   :  { %s5064_s27 = scalar_lea.vmem %s227_s8, 512  ;;  %p5069_p6 = scmp.lt.s32.totalorder %s227_s8, %s227_s8 }
 0x14a   :  { %p5065_p5 = scmp.ne.s32.totalorder %s227_s8, %s5064_s27  ;;  %p5070_p7 = scmp.lt.s32.totalorder %s5064_s27, %s5064_s27 }
 0x14c   :  { %p5071_p8 = por %p5070_p7, %p5069_p6 }
 0x14e   :  { %p5072_p9 = pnand %p5071_p8, %p5065_p5 }
 0x150   :  { %5075 = shalt.err (!%p5072_p9)
}
 0x151   :  { %232 = dma.hbm_to_vmem [thread:$0]  %s5656_s21, 512, %s227_s8, [#allocation26], %s5095_s28, %s5095_s28, %s5096_s29  }
 0x152   :  { %5076 = dma.done.wait [#allocation3], 128  }
 0x153   :  { %5077 = vsyncadd [#allocation3], 4294967168 }
 0x154   :  { %5078 = dma.done.wait [#allocation5], 272  }
 0x155   :  { %5079 = vsyncadd [#allocation5], 4294967024 }
 0x156   :  { %5080 = dma.done.wait [#allocation8], 2064  }
 0x157   :  { %5081 = vsyncadd [#allocation8], 4294965232 }
 0x158   :  { %5082 = dma.done.wait [#allocation11], 4128  }
 0x159   :  { %5083 = vsyncadd [#allocation11], 4294963168 }
 0x15a   :  { %5084 = dma.done.wait [#allocation14], 8224  }
 0x15b   :  { %5085 = vsyncadd [#allocation14], 4294959072 }
 0x15c   :  { %5086 = dma.done.wait [#allocation17], 16448  }
 0x15d   :  { %5087 = vsyncadd [#allocation17], 4294950848 }
 0x15e   :  { %5088 = dma.done.wait [#allocation20], 8256  }
 0x15f   :  { %5089 = vsyncadd [#allocation20], 4294959040 }
 0x160   :  { %5090 = dma.done.wait [#allocation23], 4128  }
 0x161   :  { %5091 = vsyncadd [#allocation23], 4294963168 }
 0x162   :  { %5092 = dma.done.wait [#allocation26], 544  }
 0x163   :  { %5093 = vsyncadd [#allocation26], 4294966752  ;;  %v5117_v0 = vmov 0.0|0.0   ;;  %vm5118_vm0 = vmmov 0   ;;  %v5119_v1 = vmov 0.0   ;;  %v2743_v2 = vld [vmem:[#allocation4] sm:$0xff]  }
 0x164   :  { %3066 = vmatprep.subr.bf16.mxu0 %v5117_v0  ;;  %2990 = vmatprep.mubr.msk.f32.mxu0 %vm5118_vm0, %v5119_v1  ;;  %v2878_v3 = vld [vmem:[#allocation4 + $0x8] sm:$0xff]   ;;  %s5685_s29 = sld [smem:[#allocation40_spill]]  ;;  %v286_v6 = vld [vmem:[#allocation2] sm:$0xff]  ;;  %vm302_vm1 = vcmask 261120   ;;  %v2734_v23 = vld [vmem:[#allocation6] ss:$0 sm:$0xff] }
 0x165   :  { %3072 = vmatprep.subr.bf16.mxu1 %v5117_v0  ;;  %3009 = vmatprep.mubr.msk.f32.mxu1 %vm5118_vm0, %v5119_v1  ;;  %v4198_v9 = vld [vmem:[#allocation9 + $0x4] ss:$8 sps:$4 sm:$0xff]   ;;  %v4200_v10 = vld [vmem:[#allocation9] ss:$8 sps:$4 sm:$0xff]   ;;  %v4201_v11 = vld [vmem:[#allocation9 + $0x14] ss:$8 sps:$4 sm:$0xff]  }
 0x166   :  { %3068 = vmatpush3.bf16.msra.mxu0 %v2743_v2  ;;  %v4203_v12 = vld [vmem:[#allocation9 + $0x10] ss:$8 sps:$4 sm:$0xff]   ;;  %v4204_v13 = vld [vmem:[#allocation9 + $0x24] ss:$8 sps:$4 sm:$0xff]   ;;  %v4206_v14 = vld [vmem:[#allocation9 + $0x20] ss:$8 sps:$4 sm:$0xff]  }
 0x167   :  { %3069 = vmatprep.subr.bf16.mxu0 %v5117_v0  ;;  %v4207_v15 = vld [vmem:[#allocation9 + $0x34] ss:$8 sps:$4 sm:$0xff]   ;;  %v4209_v16 = vld [vmem:[#allocation9 + $0x30] ss:$8 sps:$4 sm:$0xff]   ;;  %v4210_v17 = vld [vmem:[#allocation9 + $0x44] ss:$8 sps:$4 sm:$0xff]  }
 0x168   :  { %v4212_v18 = vld [vmem:[#allocation9 + $0x40] ss:$8 sps:$4 sm:$0xff]   ;;  %v4213_v19 = vld [vmem:[#allocation9 + $0x54] ss:$8 sps:$4 sm:$0xff]   ;;  %v4215_v20 = vld [vmem:[#allocation9 + $0x50] ss:$8 sps:$4 sm:$0xff]  }
 0x169   :  { %v4216_v21 = vld [vmem:[#allocation9 + $0x64] ss:$8 sps:$4 sm:$0xff]   ;;  %v4218_v22 = vld [vmem:[#allocation9 + $0x60] ss:$8 sps:$4 sm:$0xff]   ;;  %vm400_vm2 = vcmask 523264   ;;  %s5686_s14 = sld [smem:[#allocation45_spill]] }
 0x16a   :  { %v2751_v4 = vld [vmem:[%s5685_s29] sm:$0xff]   ;;  %v2879_v5 = vld [vmem:[%s5685_s29 + $0x8] sm:$0xff]   ;;  %3071 = vmatpush3.bf16.msra.mxu0 %v2878_v3  ;;  %v2880_v7 = vld [vmem:[%s5685_s29 + $0x10] sm:$0xff]   ;;  %s5688_s1 = sld [smem:[#allocation47_spill]] }
 0x16b   :  { %3074 = vmatpush3.bf16.msra.mxu1 %v2751_v4  ;;  %v2881_v8 = vld [vmem:[%s5685_s29 + $0x18] sm:$0xff]   ;;  %3085 = vmatprep.subr.bf16.mxu0 %v4198_v9  ;;  %v4221_v29 = vld [vmem:[#allocation9 + $0x70] ss:$8 sps:$4 sm:$0xff]   ;;  %v4278_v9 = vld [vmem:[#allocation15 + $0x20] ss:$16 sps:$4 sm:$0xff]  }
 0x16c   :  { %3075 = vmatprep.subr.bf16.mxu1 %v5117_v0  ;;  %v4219_v28 = vld [vmem:[#allocation9 + $0x74] ss:$8 sps:$4 sm:$0xff]   ;;  %v4222_v30 = vld [vmem:[#allocation12 + $0x4] ss:$8 sps:$4 sm:$0xff]   ;;  %v4224_v31 = vld [vmem:[#allocation12] ss:$8 sps:$4 sm:$0xff]  }
 0x16d   :  { %2991 = vmatmul.mubr.msk.f32.vlgmr.msra.gmra.mrb[0].mxu0 %vm302_vm1, %v286_v6  ;;  %v4225_v32 = vld [vmem:[#allocation12 + $0x14] ss:$8 sps:$4 sm:$0xff]   ;;  %v4227_v33 = vld [vmem:[#allocation12 + $0x10] ss:$8 sps:$4 sm:$0xff]   ;;  %v4228_v34 = vld [vmem:[#allocation12 + $0x24] ss:$8 sps:$4 sm:$0xff]  }
 0x16e   :  { %599 = vmatprep.mubr.f32.mxu0 %v5119_v1  ;;  %3087 = vmatpush1.bf16.msra.mxu0 %v4200_v10  ;;  %v4230_v35 = vld [vmem:[#allocation12 + $0x20] ss:$8 sps:$4 sm:$0xff]   ;;  %v4231_v36 = vld [vmem:[#allocation12 + $0x34] ss:$8 sps:$4 sm:$0xff]   ;;  %v4233_v37 = vld [vmem:[#allocation12 + $0x30] ss:$8 sps:$4 sm:$0xff]  }
 0x16f   :  { %3077 = vmatpush3.bf16.msra.mxu1 %v2879_v5  ;;  %3089 = vmatprep.subr.bf16.mxu0 %v4201_v11  ;;  %v4234_v38 = vld [vmem:[#allocation12 + $0x44] ss:$8 sps:$4 sm:$0xff]   ;;  %v4236_v39 = vld [vmem:[#allocation12 + $0x40] ss:$8 sps:$4 sm:$0xff]   ;;  %v4237_v40 = vld [vmem:[#allocation12 + $0x54] ss:$8 sps:$4 sm:$0xff]  }
 0x170   :  { %3078 = vmatprep.subr.bf16.mxu1 %v5117_v0  ;;  %v4239_v41 = vld [vmem:[#allocation12 + $0x50] ss:$8 sps:$4 sm:$0xff]   ;;  %v4240_v42 = vld [vmem:[#allocation12 + $0x64] ss:$8 sps:$4 sm:$0xff]   ;;  %v4242_v43 = vld [vmem:[#allocation12 + $0x60] ss:$8 sps:$4 sm:$0xff]  }
 0x171   :  { %v4243_v44 = vld [vmem:[#allocation12 + $0x74] ss:$8 sps:$4 sm:$0xff]   ;;  %v4245_v45 = vld [vmem:[#allocation12 + $0x70] ss:$8 sps:$4 sm:$0xff]   ;;  %v4246_v46 = vld [vmem:[#allocation12 + $0x84] ss:$8 sps:$4 sm:$0xff]  }
 0x172   :  { %3091 = vmatpush1.bf16.msra.mxu0 %v4203_v12  ;;  %v4248_v47 = vld [vmem:[#allocation12 + $0x80] ss:$8 sps:$4 sm:$0xff]   ;;  %v4249_v48 = vld [vmem:[#allocation12 + $0x94] ss:$8 sps:$4 sm:$0xff]   ;;  %v4251_v49 = vld [vmem:[#allocation12 + $0x90] ss:$8 sps:$4 sm:$0xff]  }
 0x173   :  { %3080 = vmatpush3.bf16.msra.mxu1 %v2880_v7  ;;  %3093 = vmatprep.subr.bf16.mxu0 %v4204_v13  ;;  %v4252_v50 = vld [vmem:[#allocation12 + $0xa4] ss:$8 sps:$4 sm:$0xff]   ;;  %v4254_v51 = vld [vmem:[#allocation12 + $0xa0] ss:$8 sps:$4 sm:$0xff]   ;;  %v4255_v52 = vld [vmem:[#allocation12 + $0xb4] ss:$8 sps:$4 sm:$0xff]  }
 0x174   :  { %3081 = vmatprep.subr.bf16.mxu1 %v5117_v0  ;;  %v4257_v53 = vld [vmem:[#allocation12 + $0xb0] ss:$8 sps:$4 sm:$0xff]   ;;  %v4258_v54 = vld [vmem:[#allocation12 + $0xc4] ss:$8 sps:$4 sm:$0xff]   ;;  %v4260_v55 = vld [vmem:[#allocation12 + $0xc0] ss:$8 sps:$4 sm:$0xff]  }
 0x175   :  { %v4261_v56 = vld [vmem:[#allocation12 + $0xd4] ss:$8 sps:$4 sm:$0xff]   ;;  %v4263_v57 = vld [vmem:[#allocation12 + $0xd0] ss:$8 sps:$4 sm:$0xff]   ;;  %v4264_v58 = vld [vmem:[#allocation12 + $0xe4] ss:$8 sps:$4 sm:$0xff]  }
 0x176   :  { %3095 = vmatpush1.bf16.msra.mxu0 %v4206_v14  ;;  %v4266_v59 = vld [vmem:[#allocation12 + $0xe0] ss:$8 sps:$4 sm:$0xff]   ;;  %v2736_v60 = vld [vmem:[#allocation7] ss:$0 sm:$0xff]  ;;  %v4269_v4 = vld [vmem:[#allocation12 + $0xf0] ss:$8 sps:$4 sm:$0xff]  }
 0x177   :  { %3083 = vmatpush3.bf16.msra.mxu1 %v2881_v8  ;;  %3097 = vmatprep.subr.bf16.mxu0 %v4207_v15  ;;  %v4267_v3 = vld [vmem:[#allocation12 + $0xf4] ss:$8 sps:$4 sm:$0xff]  }
 0x178   :  { %3117 = vmatprep.subr.bf16.mxu1 %v4222_v30  ;;  %v4270_v5 = vld [vmem:[#allocation15 + $0x4] ss:$16 sps:$4 sm:$0xff]   ;;  %v4272_v6 = vld [vmem:[#allocation15] ss:$16 sps:$4 sm:$0xff]   ;;  %v4273_v7 = vld [vmem:[#allocation15 + $0xc] ss:$16 sps:$4 sm:$0xff]  }
 0x179   :  { %v4276_v8 = vld [vmem:[#allocation15 + $0x24] ss:$16 sps:$4 sm:$0xff]   ;;  %v4284_v11 = vld [vmem:[#allocation15 + $0x40] ss:$16 sps:$4 sm:$0xff]  }
 0x17a   :  { %3099 = vmatpush1.bf16.msra.mxu0 %v4209_v16  ;;  %v4282_v10 = vld [vmem:[#allocation15 + $0x44] ss:$16 sps:$4 sm:$0xff]   ;;  %v4290_v13 = vld [vmem:[#allocation15 + $0x60] ss:$16 sps:$4 sm:$0xff]  }
 0x17b   :  { %3101 = vmatprep.subr.bf16.mxu0 %v4210_v17  ;;  %v4288_v12 = vld [vmem:[#allocation15 + $0x64] ss:$16 sps:$4 sm:$0xff]   ;;  %v4296_v15 = vld [vmem:[#allocation15 + $0x80] ss:$16 sps:$4 sm:$0xff]  }
 0x17c   :  { %v4294_v14 = vld [vmem:[#allocation15 + $0x84] ss:$16 sps:$4 sm:$0xff]   ;;  %v4302_v17 = vld [vmem:[#allocation15 + $0xa0] ss:$16 sps:$4 sm:$0xff]  }
 0x17d   :  { %v4300_v16 = vld [vmem:[#allocation15 + $0xa4] ss:$16 sps:$4 sm:$0xff]  }
 0x17e   :  { %3103 = vmatpush1.bf16.msra.mxu0 %v4212_v18  ;;  %v4306_v18 = vld [vmem:[#allocation15 + $0xc4] ss:$16 sps:$4 sm:$0xff]  }
 0x17f   :  { %3105 = vmatprep.subr.bf16.mxu0 %v4213_v19  ;;  %v4308_v19 = vld [vmem:[#allocation15 + $0xc0] ss:$16 sps:$4 sm:$0xff]   ;;  %v4342_v30 = vld [vmem:[#allocation15 + $0x184] ss:$16 sps:$4 sm:$0xff]  }
 0x182   :  { %3107 = vmatpush1.bf16.msra.mxu0 %v4215_v20  ;;  %v4312_v20 = vld [vmem:[#allocation15 + $0xe4] ss:$16 sps:$4 sm:$0xff]  }
 0x183   :  { %3109 = vmatprep.subr.bf16.mxu0 %v4216_v21  ;;  %v4314_v21 = vld [vmem:[#allocation15 + $0xe0] ss:$16 sps:$4 sm:$0xff]  }
 0x186   :  { %3111 = vmatpush1.bf16.msra.mxu0 %v4218_v22  ;;  %v4318_v22 = vld [vmem:[#allocation15 + $0x104] ss:$16 sps:$4 sm:$0xff]  }
 0x187   :  { %3113 = vmatprep.subr.bf16.mxu0 %v4219_v28  ;;  %v4336_v28 = vld [vmem:[#allocation15 + $0x164] ss:$16 sps:$4 sm:$0xff]  }
 0x18a   :  { %3115 = vmatpush1.bf16.msra.mxu0 %v4221_v29  ;;  %v4338_v29 = vld [vmem:[#allocation15 + $0x160] ss:$16 sps:$4 sm:$0xff]  }
 0x18b   :  { %3181 = vmatprep.subr.bf16.mxu0 %v4270_v5  ;;  %v4329_v5 = vld [vmem:[#allocation15 + $0x128] ss:$16 sps:$4 sm:$0xff]  }
 0x240   :  { %v372_v24 = vpop.f32.mrb[0].mxu0 }
 0x241   :  { %v373_v25 = vadd.f32 %v2734_v23, %v372_v24  ;;  %v2992_v26 = vpop.f32.mrb[1].mxu0  ;;  %v4320_v23 = vld [vmem:[#allocation15 + $0x100] ss:$16 sps:$4 sm:$0xff]   ;;  %v4324_v24 = vld [vmem:[#allocation15 + $0x124] ss:$16 sps:$4 sm:$0xff]  }
 0x242   :  { %v4330_v26 = vld [vmem:[#allocation15 + $0x144] ss:$16 sps:$4 sm:$0xff]  }
 0x243   :  { %v376_v27 = vmax.f32 %v373_v25, 0.0  ;;  %v4326_v25 = vld [vmem:[#allocation15 + $0x120] ss:$16 sps:$4 sm:$0xff]  }
 0x245   :  { %3010 = vmatmul.mubr.msk.f32.vlgmr.msra.gmra.mrb[0].mxu1 %vm400_vm2, %v376_v27  ;;  %v4332_v27 = vld [vmem:[#allocation15 + $0x140] ss:$16 sps:$4 sm:$0xff]  }
 0x246   :  { %3119 = vmatpush1.bf16.msra.mxu1 %v4224_v31  ;;  %v4344_v31 = vld [vmem:[#allocation15 + $0x180] ss:$16 sps:$4 sm:$0xff]  }
 0x247   :  { %3121 = vmatprep.subr.bf16.mxu1 %v4225_v32  ;;  %v4348_v32 = vld [vmem:[#allocation15 + $0x1a4] ss:$16 sps:$4 sm:$0xff]  }
 0x24a   :  { %3123 = vmatpush1.bf16.msra.mxu1 %v4227_v33  ;;  %v4350_v33 = vld [vmem:[#allocation15 + $0x1a0] ss:$16 sps:$4 sm:$0xff]  }
 0x24b   :  { %3125 = vmatprep.subr.bf16.mxu1 %v4228_v34  ;;  %v4354_v34 = vld [vmem:[#allocation15 + $0x1c4] ss:$16 sps:$4 sm:$0xff]  }
 0x24e   :  { %3127 = vmatpush1.bf16.msra.mxu1 %v4230_v35  ;;  %v4356_v35 = vld [vmem:[#allocation15 + $0x1c0] ss:$16 sps:$4 sm:$0xff]  }
 0x24f   :  { %3129 = vmatprep.subr.bf16.mxu1 %v4231_v36  ;;  %v525_v36 = vlaneseq }
 0x252   :  { %3131 = vmatpush1.bf16.msra.mxu1 %v4233_v37  ;;  %v5486_v37 = vshrl.u32 %v525_v36, 7  ;;  %v4377_v36 = vld [vmem:[#allocation18 + $0x28] ss:$16 sps:$4 sm:$0xff]  }
 0x253   :  { %3133 = vmatprep.subr.bf16.mxu1 %v4234_v38 }
 0x254   :  { %v5489_v38 = vsub.s32 0, %v5486_v37 }
 0x256   :  { %3135 = vmatpush1.bf16.msra.mxu1 %v4236_v39  ;;  %v523_v39 = vld [vmem:[#allocation10] sm:$0x3] }
 0x257   :  { %3137 = vmatprep.subr.bf16.mxu1 %v4237_v40  ;;  %v5492_v40 = vsub.s32 1, %v5486_v37 }
 0x25a   :  { %3139 = vmatpush1.bf16.msra.mxu1 %v4239_v41  ;;  %v528_v41 = vrot.slane %v523_v39, %v5489_v38 }
 0x25b   :  { %3141 = vmatprep.subr.bf16.mxu1 %v4240_v42  ;;  %v532_v42 = vrot.slane %v523_v39, %v5492_v40  ;;  %v4378_v39 = vld [vmem:[#allocation18 + $0x44] ss:$16 sps:$4 sm:$0xff]  }
 0x25e   :  { %3143 = vmatpush1.bf16.msra.mxu1 %v4242_v43 }
 0x25f   :  { %3145 = vmatprep.subr.bf16.mxu1 %v4243_v44 }
 0x262   :  { %3147 = vmatpush1.bf16.msra.mxu1 %v4245_v45 }
 0x263   :  { %3149 = vmatprep.subr.bf16.mxu1 %v4246_v46 }
 0x266   :  { %3151 = vmatpush1.bf16.msra.mxu1 %v4248_v47 }
 0x267   :  { %3153 = vmatprep.subr.bf16.mxu1 %v4249_v48  ;;  %v4275_v48 = vld [vmem:[#allocation15 + $0x8] ss:$16 sps:$4 sm:$0xff]  }
 0x26a   :  { %3155 = vmatpush1.bf16.msra.mxu1 %v4251_v49 }
 0x26b   :  { %3157 = vmatprep.subr.bf16.mxu1 %v4252_v50  ;;  %v4279_v50 = vld [vmem:[#allocation15 + $0x2c] ss:$16 sps:$4 sm:$0xff]  }
 0x26e   :  { %3159 = vmatpush1.bf16.msra.mxu1 %v4254_v51  ;;  %v4281_v51 = vld [vmem:[#allocation15 + $0x28] ss:$16 sps:$4 sm:$0xff]  }
 0x26f   :  { %3161 = vmatprep.subr.bf16.mxu1 %v4255_v52  ;;  %v4285_v52 = vld [vmem:[#allocation15 + $0x4c] ss:$16 sps:$4 sm:$0xff]  }
 0x272   :  { %3163 = vmatpush1.bf16.msra.mxu1 %v4257_v53  ;;  %v4287_v53 = vld [vmem:[#allocation15 + $0x48] ss:$16 sps:$4 sm:$0xff]  }
 0x273   :  { %3165 = vmatprep.subr.bf16.mxu1 %v4258_v54  ;;  %v4291_v54 = vld [vmem:[#allocation15 + $0x6c] ss:$16 sps:$4 sm:$0xff]  }
 0x276   :  { %3167 = vmatpush1.bf16.msra.mxu1 %v4260_v55  ;;  %v4293_v55 = vld [vmem:[#allocation15 + $0x68] ss:$16 sps:$4 sm:$0xff]  }
 0x277   :  { %3169 = vmatprep.subr.bf16.mxu1 %v4261_v56  ;;  %v4297_v56 = vld [vmem:[#allocation15 + $0x8c] ss:$16 sps:$4 sm:$0xff]  }
 0x27a   :  { %3171 = vmatpush1.bf16.msra.mxu1 %v4263_v57  ;;  %v4299_v57 = vld [vmem:[#allocation15 + $0x88] ss:$16 sps:$4 sm:$0xff]  }
 0x27b   :  { %3173 = vmatprep.subr.bf16.mxu1 %v4264_v58  ;;  %v4303_v58 = vld [vmem:[#allocation15 + $0xac] ss:$16 sps:$4 sm:$0xff]  }
 0x27e   :  { %3175 = vmatpush1.bf16.msra.mxu1 %v4266_v59  ;;  %v4305_v59 = vld [vmem:[#allocation15 + $0xa8] ss:$16 sps:$4 sm:$0xff]  }
 0x27f   :  { %3177 = vmatprep.subr.bf16.mxu1 %v4267_v3  ;;  %v4323_v3 = vld [vmem:[#allocation15 + $0x108] ss:$16 sps:$4 sm:$0xff]  }
 0x282   :  { %3179 = vmatpush1.bf16.msra.mxu1 %v4269_v4  ;;  %v4327_v4 = vld [vmem:[#allocation15 + $0x12c] ss:$16 sps:$4 sm:$0xff]  }
 0x283   :  { %3245 = vmatprep.subr.bf16.mxu1 %v4273_v7  ;;  %v4335_v7 = vld [vmem:[#allocation15 + $0x148] ss:$16 sps:$4 sm:$0xff]  }
 0x318   :  { %v470_v61 = vpop.f32.mrb[0].mxu1 }
 0x319   :  { %v471_v62 = vadd.f32 %v2736_v60, %v470_v61  ;;  %v3011_v63 = vpop.f32.mrb[1].mxu1  ;;  %v4309_v60 = vld [vmem:[#allocation15 + $0xcc] ss:$16 sps:$4 sm:$0xff]   ;;  %v4311_v61 = vld [vmem:[#allocation15 + $0xc8] ss:$16 sps:$4 sm:$0xff]  }
 0x31a   :  { %v4317_v63 = vld [vmem:[#allocation15 + $0xe8] ss:$16 sps:$4 sm:$0xff]  }
 0x31b   :  { %v474_v2 = vmax.f32 %v471_v62, 0.0  ;;  %v4315_v62 = vld [vmem:[#allocation15 + $0xec] ss:$16 sps:$4 sm:$0xff]  }
 0x31d   :  { %600 = vmatmul.mubr.f32.vlgmr.msra.gmra.mrb[2].mxu0 %v474_v2  ;;  %v4321_v2 = vld [vmem:[#allocation15 + $0x10c] ss:$16 sps:$4 sm:$0xff]  }
 0x31e   :  { %3183 = vmatpush1.bf16.msra.mxu0 %v4272_v6  ;;  %v4333_v6 = vld [vmem:[#allocation15 + $0x14c] ss:$16 sps:$4 sm:$0xff]  }
 0x31f   :  { %3185 = vmatprep.subr.bf16.mxu0 %v4276_v8  ;;  %v4339_v8 = vld [vmem:[#allocation15 + $0x16c] ss:$16 sps:$4 sm:$0xff]  }
 0x322   :  { %3187 = vmatpush1.bf16.msra.mxu0 %v4278_v9  ;;  %v4341_v9 = vld [vmem:[#allocation15 + $0x168] ss:$16 sps:$4 sm:$0xff]  }
 0x323   :  { %3189 = vmatprep.subr.bf16.mxu0 %v4282_v10  ;;  %v4345_v10 = vld [vmem:[#allocation15 + $0x18c] ss:$16 sps:$4 sm:$0xff]  }
 0x326   :  { %3191 = vmatpush1.bf16.msra.mxu0 %v4284_v11  ;;  %v4347_v11 = vld [vmem:[#allocation15 + $0x188] ss:$16 sps:$4 sm:$0xff]  }
 0x327   :  { %3193 = vmatprep.subr.bf16.mxu0 %v4288_v12  ;;  %v4351_v12 = vld [vmem:[#allocation15 + $0x1ac] ss:$16 sps:$4 sm:$0xff]  }
 0x32a   :  { %3195 = vmatpush1.bf16.msra.mxu0 %v4290_v13  ;;  %v4353_v13 = vld [vmem:[#allocation15 + $0x1a8] ss:$16 sps:$4 sm:$0xff]  }
 0x32b   :  { %3197 = vmatprep.subr.bf16.mxu0 %v4294_v14  ;;  %v4357_v14 = vld [vmem:[#allocation15 + $0x1cc] ss:$16 sps:$4 sm:$0xff]  }
 0x32e   :  { %3199 = vmatpush1.bf16.msra.mxu0 %v4296_v15  ;;  %v4359_v15 = vld [vmem:[#allocation15 + $0x1c8] ss:$16 sps:$4 sm:$0xff]  }
 0x32f   :  { %3201 = vmatprep.subr.bf16.mxu0 %v4300_v16  ;;  %v4360_v16 = vld [vmem:[#allocation15 + $0x1e4] ss:$16 sps:$4 sm:$0xff]  }
 0x332   :  { %3203 = vmatpush1.bf16.msra.mxu0 %v4302_v17  ;;  %v4363_v17 = vld [vmem:[#allocation15 + $0x1ec] ss:$16 sps:$4 sm:$0xff]  }
 0x333   :  { %3205 = vmatprep.subr.bf16.mxu0 %v4306_v18  ;;  %v4362_v18 = vld [vmem:[#allocation15 + $0x1e0] ss:$16 sps:$4 sm:$0xff]  }
 0x336   :  { %3207 = vmatpush1.bf16.msra.mxu0 %v4308_v19  ;;  %v4365_v19 = vld [vmem:[#allocation15 + $0x1e8] ss:$16 sps:$4 sm:$0xff]  }
 0x337   :  { %3209 = vmatprep.subr.bf16.mxu0 %v4312_v20  ;;  %v4366_v20 = vld [vmem:[#allocation18 + $0x4] ss:$16 sps:$4 sm:$0xff]  }
 0x33a   :  { %3211 = vmatpush1.bf16.msra.mxu0 %v4314_v21  ;;  %v4369_v21 = vld [vmem:[#allocation18 + $0xc] ss:$16 sps:$4 sm:$0xff]  }
 0x33b   :  { %3213 = vmatprep.subr.bf16.mxu0 %v4318_v22  ;;  %v704_v22 = vld [vmem:[#allocation13] sm:$0x3] }
 0x33e   :  { %3215 = vmatpush1.bf16.msra.mxu0 %v4320_v23  ;;  %v709_v23 = vrot.slane %v704_v22, %v5489_v38 }
 0x33f   :  { %3217 = vmatprep.subr.bf16.mxu0 %v4324_v24  ;;  %v713_v24 = vrot.slane %v704_v22, %v5492_v40  ;;  %v4444_v22 = vld [vmem:[#allocation18 + $0x1a4] ss:$16 sps:$4 sm:$0xff]  }
 0x342   :  { %3219 = vmatpush1.bf16.msra.mxu0 %v4326_v25 }
 0x343   :  { %3221 = vmatprep.subr.bf16.mxu0 %v4330_v26 }
 0x346   :  { %3223 = vmatpush1.bf16.msra.mxu0 %v4332_v27 }
 0x347   :  { %3225 = vmatprep.subr.bf16.mxu0 %v4336_v28 }
 0x34a   :  { %3227 = vmatpush1.bf16.msra.mxu0 %v4338_v29 }
 0x34b   :  { %3229 = vmatprep.subr.bf16.mxu0 %v4342_v30  ;;  %v4368_v30 = vld [vmem:[#allocation18] ss:$16 sps:$4 sm:$0xff]  }
 0x34e   :  { %3231 = vmatpush1.bf16.msra.mxu0 %v4344_v31  ;;  %v4371_v31 = vld [vmem:[#allocation18 + $0x8] ss:$16 sps:$4 sm:$0xff]  }
 0x34f   :  { %3233 = vmatprep.subr.bf16.mxu0 %v4348_v32 }
 0x352   :  { %3235 = vmatpush1.bf16.msra.mxu0 %v4350_v33  ;;  %v4372_v33 = vld [vmem:[#allocation18 + $0x24] ss:$16 sps:$4 sm:$0xff]  }
 0x353   :  { %3237 = vmatprep.subr.bf16.mxu0 %v4354_v34  ;;  %v4375_v34 = vld [vmem:[#allocation18 + $0x2c] ss:$16 sps:$4 sm:$0xff]  }
 0x356   :  { %3239 = vmatpush1.bf16.msra.mxu0 %v4356_v35  ;;  %v4374_v35 = vld [vmem:[#allocation18 + $0x20] ss:$16 sps:$4 sm:$0xff]  }
 0x357   :  { %3241 = vmatprep.subr.bf16.mxu0 %v4360_v16  ;;  %v4434_v16 = vld [vmem:[#allocation18 + $0x160] ss:$16 sps:$4 sm:$0xff]  }
 0x35a   :  { %3243 = vmatpush1.bf16.msra.mxu0 %v4362_v18  ;;  %v4438_v18 = vld [vmem:[#allocation18 + $0x184] ss:$16 sps:$4 sm:$0xff]  }
 0x35b   :  { %3309 = vmatprep.subr.bf16.mxu0 %v4366_v20  ;;  %v4440_v20 = vld [vmem:[#allocation18 + $0x180] ss:$16 sps:$4 sm:$0xff]  }
 0x3f0   :  { %v601_v43 = vpop.f32.mrb[2].mxu0 }
 0x3f1   :  { %v602_v44 = vadd.f32 %v601_v43, %v528_v41  ;;  %v603_v45 = vpop.f32.mrb[3].mxu0  ;;  %v4381_v41 = vld [vmem:[#allocation18 + $0x4c] ss:$16 sps:$4 sm:$0xff]   ;;  %v4383_v43 = vld [vmem:[#allocation18 + $0x48] ss:$16 sps:$4 sm:$0xff]  }
 0x3f2   :  { %v604_v46 = vadd.f32 %v603_v45, %v532_v42  ;;  %v4380_v42 = vld [vmem:[#allocation18 + $0x40] ss:$16 sps:$4 sm:$0xff]   ;;  %v4387_v45 = vld [vmem:[#allocation18 + $0x6c] ss:$16 sps:$4 sm:$0xff]  }
 0x3f3   :  { %v606_v49 = vmax.f32 %v602_v44, 0.0  ;;  %v4384_v44 = vld [vmem:[#allocation18 + $0x64] ss:$16 sps:$4 sm:$0xff]  }
 0x3f4   :  { %v607_v47 = vmax.f32 %v604_v46, 0.0  ;;  %v4386_v46 = vld [vmem:[#allocation18 + $0x60] ss:$16 sps:$4 sm:$0xff]  }
 0x3f6   :  { %780 = vmatprep.mubr.f32.mxu1 %v607_v47  ;;  %v4389_v47 = vld [vmem:[#allocation18 + $0x68] ss:$16 sps:$4 sm:$0xff]  }
 0x3f7   :  { %781 = vmatmul.mubr.f32.vlgmr.msra.gmra.mrb[2].mxu1 %v606_v49  ;;  %v4393_v49 = vld [vmem:[#allocation18 + $0x8c] ss:$16 sps:$4 sm:$0xff]  }
 0x3f8   :  { %3247 = vmatpush1.bf16.msra.mxu1 %v4275_v48  ;;  %v4390_v48 = vld [vmem:[#allocation18 + $0x84] ss:$16 sps:$4 sm:$0xff]  }
 0x3f9   :  { %3249 = vmatprep.subr.bf16.mxu1 %v4279_v50  ;;  %v4392_v50 = vld [vmem:[#allocation18 + $0x80] ss:$16 sps:$4 sm:$0xff]  }
 0x3fc   :  { %3251 = vmatpush1.bf16.msra.mxu1 %v4281_v51  ;;  %v4395_v51 = vld [vmem:[#allocation18 + $0x88] ss:$16 sps:$4 sm:$0xff]  }
 0x3fd   :  { %3253 = vmatprep.subr.bf16.mxu1 %v4285_v52  ;;  %v4396_v52 = vld [vmem:[#allocation18 + $0xa4] ss:$16 sps:$4 sm:$0xff]  }
 0x400   :  { %3255 = vmatpush1.bf16.msra.mxu1 %v4287_v53  ;;  %v4399_v53 = vld [vmem:[#allocation18 + $0xac] ss:$16 sps:$4 sm:$0xff]  }
 0x401   :  { %3257 = vmatprep.subr.bf16.mxu1 %v4291_v54  ;;  %v4398_v54 = vld [vmem:[#allocation18 + $0xa0] ss:$16 sps:$4 sm:$0xff]  }
 0x404   :  { %3259 = vmatpush1.bf16.msra.mxu1 %v4293_v55  ;;  %v4401_v55 = vld [vmem:[#allocation18 + $0xa8] ss:$16 sps:$4 sm:$0xff]  }
 0x405   :  { %3261 = vmatprep.subr.bf16.mxu1 %v4297_v56  ;;  %v4402_v56 = vld [vmem:[#allocation18 + $0xc4] ss:$16 sps:$4 sm:$0xff]  }
 0x408   :  { %3263 = vmatpush1.bf16.msra.mxu1 %v4299_v57  ;;  %v4405_v57 = vld [vmem:[#allocation18 + $0xcc] ss:$16 sps:$4 sm:$0xff]  }
 0x409   :  { %3265 = vmatprep.subr.bf16.mxu1 %v4303_v58  ;;  %v4404_v58 = vld [vmem:[#allocation18 + $0xc0] ss:$16 sps:$4 sm:$0xff]  }
 0x40c   :  { %3267 = vmatpush1.bf16.msra.mxu1 %v4305_v59  ;;  %v4407_v59 = vld [vmem:[#allocation18 + $0xc8] ss:$16 sps:$4 sm:$0xff]  }
 0x40d   :  { %3269 = vmatprep.subr.bf16.mxu1 %v4309_v60  ;;  %v4408_v60 = vld [vmem:[#allocation18 + $0xe4] ss:$16 sps:$4 sm:$0xff]  }
 0x410   :  { %3271 = vmatpush1.bf16.msra.mxu1 %v4311_v61  ;;  %v4411_v61 = vld [vmem:[#allocation18 + $0xec] ss:$16 sps:$4 sm:$0xff]  }
 0x411   :  { %3273 = vmatprep.subr.bf16.mxu1 %v4315_v62  ;;  %v4410_v62 = vld [vmem:[#allocation18 + $0xe0] ss:$16 sps:$4 sm:$0xff]  }
 0x414   :  { %3275 = vmatpush1.bf16.msra.mxu1 %v4317_v63  ;;  %v4413_v63 = vld [vmem:[#allocation18 + $0xe8] ss:$16 sps:$4 sm:$0xff]  }
 0x415   :  { %3277 = vmatprep.subr.bf16.mxu1 %v4321_v2  ;;  %v4414_v2 = vld [vmem:[#allocation18 + $0x104] ss:$16 sps:$4 sm:$0xff]  }
 0x418   :  { %3279 = vmatpush1.bf16.msra.mxu1 %v4323_v3  ;;  %v4417_v3 = vld [vmem:[#allocation18 + $0x10c] ss:$16 sps:$4 sm:$0xff]  }
 0x419   :  { %3281 = vmatprep.subr.bf16.mxu1 %v4327_v4  ;;  %v4416_v4 = vld [vmem:[#allocation18 + $0x100] ss:$16 sps:$4 sm:$0xff]  }
 0x41c   :  { %3283 = vmatpush1.bf16.msra.mxu1 %v4329_v5  ;;  %v4419_v5 = vld [vmem:[#allocation18 + $0x108] ss:$16 sps:$4 sm:$0xff]  }
 0x41d   :  { %3285 = vmatprep.subr.bf16.mxu1 %v4333_v6  ;;  %v4420_v6 = vld [vmem:[#allocation18 + $0x124] ss:$16 sps:$4 sm:$0xff]  }
 0x420   :  { %3287 = vmatpush1.bf16.msra.mxu1 %v4335_v7  ;;  %v4423_v7 = vld [vmem:[#allocation18 + $0x12c] ss:$16 sps:$4 sm:$0xff]  }
 0x421   :  { %3289 = vmatprep.subr.bf16.mxu1 %v4339_v8  ;;  %v4422_v8 = vld [vmem:[#allocation18 + $0x120] ss:$16 sps:$4 sm:$0xff]  }
 0x424   :  { %3291 = vmatpush1.bf16.msra.mxu1 %v4341_v9  ;;  %v4425_v9 = vld [vmem:[#allocation18 + $0x128] ss:$16 sps:$4 sm:$0xff]  }
 0x425   :  { %3293 = vmatprep.subr.bf16.mxu1 %v4345_v10  ;;  %v4426_v10 = vld [vmem:[#allocation18 + $0x144] ss:$16 sps:$4 sm:$0xff]  }
 0x428   :  { %3295 = vmatpush1.bf16.msra.mxu1 %v4347_v11  ;;  %v4429_v11 = vld [vmem:[#allocation18 + $0x14c] ss:$16 sps:$4 sm:$0xff]  }
 0x429   :  { %3297 = vmatprep.subr.bf16.mxu1 %v4351_v12  ;;  %v4428_v12 = vld [vmem:[#allocation18 + $0x140] ss:$16 sps:$4 sm:$0xff]  }
 0x42c   :  { %3299 = vmatpush1.bf16.msra.mxu1 %v4353_v13  ;;  %v4431_v13 = vld [vmem:[#allocation18 + $0x148] ss:$16 sps:$4 sm:$0xff]  }
 0x42d   :  { %3301 = vmatprep.subr.bf16.mxu1 %v4357_v14  ;;  %v4432_v14 = vld [vmem:[#allocation18 + $0x164] ss:$16 sps:$4 sm:$0xff]  }
 0x430   :  { %3303 = vmatpush1.bf16.msra.mxu1 %v4359_v15  ;;  %v4435_v15 = vld [vmem:[#allocation18 + $0x16c] ss:$16 sps:$4 sm:$0xff]  }
 0x431   :  { %3305 = vmatprep.subr.bf16.mxu1 %v4363_v17  ;;  %v4437_v17 = vld [vmem:[#allocation18 + $0x168] ss:$16 sps:$4 sm:$0xff]  }
 0x434   :  { %3307 = vmatpush1.bf16.msra.mxu1 %v4365_v19  ;;  %v4441_v19 = vld [vmem:[#allocation18 + $0x18c] ss:$16 sps:$4 sm:$0xff]  }
 0x435   :  { %3437 = vmatprep.subr.bf16.mxu1 %v4369_v21  ;;  %v4443_v21 = vld [vmem:[#allocation18 + $0x188] ss:$16 sps:$4 sm:$0xff]  }
 0x4ca   :  { %v782_v25 = vpop.f32.mrb[2].mxu1 }
 0x4cb   :  { %v783_v26 = vadd.f32 %v782_v25, %v709_v23  ;;  %v784_v27 = vpop.f32.mrb[3].mxu1  ;;  %v4447_v23 = vld [vmem:[#allocation18 + $0x1ac] ss:$16 sps:$4 sm:$0xff]   ;;  %v4449_v25 = vld [vmem:[#allocation18 + $0x1a8] ss:$16 sps:$4 sm:$0xff]  }
 0x4cc   :  { %v785_v28 = vadd.f32 %v784_v27, %v713_v24  ;;  %v4446_v24 = vld [vmem:[#allocation18 + $0x1a0] ss:$16 sps:$4 sm:$0xff]   ;;  %v4453_v27 = vld [vmem:[#allocation18 + $0x1cc] ss:$16 sps:$4 sm:$0xff]  }
 0x4cd   :  { %v787_v32 = vmax.f32 %v783_v26, 0.0  ;;  %v4450_v26 = vld [vmem:[#allocation18 + $0x1c4] ss:$16 sps:$4 sm:$0xff]  }
 0x4ce   :  { %v788_v29 = vmax.f32 %v785_v28, 0.0  ;;  %v4452_v28 = vld [vmem:[#allocation18 + $0x1c0] ss:$16 sps:$4 sm:$0xff]  }
 0x4d0   :  { %1067 = vmatprep.mubr.f32.mxu0 %v788_v29  ;;  %1138 = vmatprep.mubr.f32.mxu1 %v788_v29  ;;  %v4455_v29 = vld [vmem:[#allocation18 + $0x1c8] ss:$16 sps:$4 sm:$0xff]  }
 0x4d1   :  { %1068 = vmatmul.mubr.f32.vlgmr.msra.gmra.mrb[4].mxu0 %v787_v32  ;;  %1139 = vmatmul.mubr.f32.vlgmr.msra.gmra.mrb[4].mxu1 %v787_v32  ;;  %v4458_v32 = vld [vmem:[#allocation18 + $0x1e0] ss:$16 sps:$4 sm:$0xff]  }
 0x4d2   :  { %3311 = vmatpush1.bf16.msra.mxu0 %v4368_v30  ;;  %3439 = vmatpush1.bf16.msra.mxu1 %v4371_v31  ;;  %v4456_v30 = vld [vmem:[#allocation18 + $0x1e4] ss:$16 sps:$4 sm:$0xff]   ;;  %v4459_v31 = vld [vmem:[#allocation18 + $0x1ec] ss:$16 sps:$4 sm:$0xff]  }
 0x4d3   :  { %3313 = vmatprep.subr.bf16.mxu0 %v4372_v33  ;;  %3441 = vmatprep.subr.bf16.mxu1 %v4375_v34  ;;  %v4461_v33 = vld [vmem:[#allocation18 + $0x1e8] ss:$16 sps:$4 sm:$0xff]   ;;  %v4462_v34 = vld [vmem:[#allocation18 + $0x204] ss:$16 sps:$4 sm:$0xff]  }
 0x4d6   :  { %3315 = vmatpush1.bf16.msra.mxu0 %v4374_v35  ;;  %3443 = vmatpush1.bf16.msra.mxu1 %v4377_v36  ;;  %v4465_v35 = vld [vmem:[#allocation18 + $0x20c] ss:$16 sps:$4 sm:$0xff]  }
 0x4d7   :  { %3317 = vmatprep.subr.bf16.mxu0 %v4378_v39  ;;  %3445 = vmatprep.subr.bf16.mxu1 %v4381_v41  ;;  %v5498_v36 = vld [vmem:[#allocation16] sm:$0xf]  ;;  %v997_v39 = vsub.s32 3, %v5486_v37 }
 0x4d8   :  { %v986_v41 = vrot.slane %v5498_v36, %v5489_v38 }
 0x4da   :  { %3319 = vmatpush1.bf16.msra.mxu0 %v4380_v42  ;;  %3447 = vmatpush1.bf16.msra.mxu1 %v4383_v43  ;;  %v990_v42 = vrot.slane %v5498_v36, %v5492_v40  ;;  %v998_v43 = vrot.slane %v5498_v36, %v997_v39 }
 0x4db   :  { %3321 = vmatprep.subr.bf16.mxu0 %v4384_v44  ;;  %3449 = vmatprep.subr.bf16.mxu1 %v4387_v45 }
 0x4de   :  { %3323 = vmatpush1.bf16.msra.mxu0 %v4386_v46  ;;  %3451 = vmatpush1.bf16.msra.mxu1 %v4389_v47 }
 0x4df   :  { %3325 = vmatprep.subr.bf16.mxu0 %v4390_v48  ;;  %3453 = vmatprep.subr.bf16.mxu1 %v4393_v49 }
 0x4e2   :  { %3327 = vmatpush1.bf16.msra.mxu0 %v4392_v50  ;;  %3455 = vmatpush1.bf16.msra.mxu1 %v4395_v51 }
 0x4e3   :  { %3329 = vmatprep.subr.bf16.mxu0 %v4396_v52  ;;  %3457 = vmatprep.subr.bf16.mxu1 %v4399_v53  ;;  %v4464_v52 = vld [vmem:[#allocation18 + $0x200] ss:$16 sps:$4 sm:$0xff]   ;;  %v4467_v53 = vld [vmem:[#allocation18 + $0x208] ss:$16 sps:$4 sm:$0xff]  }
 0x4e6   :  { %3331 = vmatpush1.bf16.msra.mxu0 %v4398_v54  ;;  %3459 = vmatpush1.bf16.msra.mxu1 %v4401_v55  ;;  %v4468_v55 = vld [vmem:[#allocation18 + $0x224] ss:$16 sps:$4 sm:$0xff]  }
 0x4e7   :  { %3333 = vmatprep.subr.bf16.mxu0 %v4402_v56  ;;  %3461 = vmatprep.subr.bf16.mxu1 %v4405_v57  ;;  %v4471_v56 = vld [vmem:[#allocation18 + $0x22c] ss:$16 sps:$4 sm:$0xff]  }
 0x4ea   :  { %3335 = vmatpush1.bf16.msra.mxu0 %v4404_v58  ;;  %3463 = vmatpush1.bf16.msra.mxu1 %v4407_v59  ;;  %v4470_v58 = vld [vmem:[#allocation18 + $0x220] ss:$16 sps:$4 sm:$0xff]   ;;  %v4473_v59 = vld [vmem:[#allocation18 + $0x228] ss:$16 sps:$4 sm:$0xff]  }
 0x4eb   :  { %3337 = vmatprep.subr.bf16.mxu0 %v4408_v60  ;;  %3465 = vmatprep.subr.bf16.mxu1 %v4411_v61  ;;  %v4474_v60 = vld [vmem:[#allocation18 + $0x244] ss:$16 sps:$4 sm:$0xff]   ;;  %v4477_v61 = vld [vmem:[#allocation18 + $0x24c] ss:$16 sps:$4 sm:$0xff]  }
 0x4ee   :  { %3339 = vmatpush1.bf16.msra.mxu0 %v4410_v62  ;;  %3467 = vmatpush1.bf16.msra.mxu1 %v4413_v63  ;;  %v4476_v62 = vld [vmem:[#allocation18 + $0x240] ss:$16 sps:$4 sm:$0xff]   ;;  %v4479_v63 = vld [vmem:[#allocation18 + $0x248] ss:$16 sps:$4 sm:$0xff]  }
 0x4ef   :  { %3341 = vmatprep.subr.bf16.mxu0 %v4414_v2  ;;  %3469 = vmatprep.subr.bf16.mxu1 %v4417_v3  ;;  %v4480_v2 = vld [vmem:[#allocation18 + $0x264] ss:$16 sps:$4 sm:$0xff]   ;;  %v4483_v3 = vld [vmem:[#allocation18 + $0x26c] ss:$16 sps:$4 sm:$0xff]  }
 0x4f2   :  { %3343 = vmatpush1.bf16.msra.mxu0 %v4416_v4  ;;  %3471 = vmatpush1.bf16.msra.mxu1 %v4419_v5  ;;  %v4482_v4 = vld [vmem:[#allocation18 + $0x260] ss:$16 sps:$4 sm:$0xff]   ;;  %v4485_v5 = vld [vmem:[#allocation18 + $0x268] ss:$16 sps:$4 sm:$0xff]  }
 0x4f3   :  { %3345 = vmatprep.subr.bf16.mxu0 %v4420_v6  ;;  %3473 = vmatprep.subr.bf16.mxu1 %v4423_v7  ;;  %v4486_v6 = vld [vmem:[#allocation18 + $0x284] ss:$16 sps:$4 sm:$0xff]   ;;  %v4489_v7 = vld [vmem:[#allocation18 + $0x28c] ss:$16 sps:$4 sm:$0xff]  }
 0x4f6   :  { %3347 = vmatpush1.bf16.msra.mxu0 %v4422_v8  ;;  %3475 = vmatpush1.bf16.msra.mxu1 %v4425_v9  ;;  %v4488_v8 = vld [vmem:[#allocation18 + $0x280] ss:$16 sps:$4 sm:$0xff]   ;;  %v4491_v9 = vld [vmem:[#allocation18 + $0x288] ss:$16 sps:$4 sm:$0xff]  }
 0x4f7   :  { %3349 = vmatprep.subr.bf16.mxu0 %v4426_v10  ;;  %3477 = vmatprep.subr.bf16.mxu1 %v4429_v11  ;;  %v4492_v10 = vld [vmem:[#allocation18 + $0x2a4] ss:$16 sps:$4 sm:$0xff]   ;;  %v4495_v11 = vld [vmem:[#allocation18 + $0x2ac] ss:$16 sps:$4 sm:$0xff]  }
 0x4fa   :  { %3351 = vmatpush1.bf16.msra.mxu0 %v4428_v12  ;;  %3479 = vmatpush1.bf16.msra.mxu1 %v4431_v13  ;;  %v4494_v12 = vld [vmem:[#allocation18 + $0x2a0] ss:$16 sps:$4 sm:$0xff]   ;;  %v4497_v13 = vld [vmem:[#allocation18 + $0x2a8] ss:$16 sps:$4 sm:$0xff]  }
 0x4fb   :  { %3353 = vmatprep.subr.bf16.mxu0 %v4432_v14  ;;  %3481 = vmatprep.subr.bf16.mxu1 %v4435_v15  ;;  %v4498_v14 = vld [vmem:[#allocation18 + $0x2c4] ss:$16 sps:$4 sm:$0xff]   ;;  %v4501_v15 = vld [vmem:[#allocation18 + $0x2cc] ss:$16 sps:$4 sm:$0xff]  }
 0x4fe   :  { %3355 = vmatpush1.bf16.msra.mxu0 %v4434_v16  ;;  %3483 = vmatpush1.bf16.msra.mxu1 %v4437_v17  ;;  %v4500_v16 = vld [vmem:[#allocation18 + $0x2c0] ss:$16 sps:$4 sm:$0xff]   ;;  %v4503_v17 = vld [vmem:[#allocation18 + $0x2c8] ss:$16 sps:$4 sm:$0xff]  }
 0x4ff   :  { %3357 = vmatprep.subr.bf16.mxu0 %v4438_v18  ;;  %3485 = vmatprep.subr.bf16.mxu1 %v4441_v19  ;;  %v4504_v18 = vld [vmem:[#allocation18 + $0x2e4] ss:$16 sps:$4 sm:$0xff]   ;;  %v4507_v19 = vld [vmem:[#allocation18 + $0x2ec] ss:$16 sps:$4 sm:$0xff]  }
 0x502   :  { %3359 = vmatpush1.bf16.msra.mxu0 %v4440_v20  ;;  %3487 = vmatpush1.bf16.msra.mxu1 %v4443_v21  ;;  %v4506_v20 = vld [vmem:[#allocation18 + $0x2e0] ss:$16 sps:$4 sm:$0xff]   ;;  %v4509_v21 = vld [vmem:[#allocation18 + $0x2e8] ss:$16 sps:$4 sm:$0xff]  }
 0x503   :  { %3361 = vmatprep.subr.bf16.mxu0 %v4444_v22  ;;  %3489 = vmatprep.subr.bf16.mxu1 %v4447_v23  ;;  %v4510_v22 = vld [vmem:[#allocation18 + $0x304] ss:$16 sps:$4 sm:$0xff]   ;;  %v4513_v23 = vld [vmem:[#allocation18 + $0x30c] ss:$16 sps:$4 sm:$0xff]  }
 0x506   :  { %3363 = vmatpush1.bf16.msra.mxu0 %v4446_v24  ;;  %3491 = vmatpush1.bf16.msra.mxu1 %v4449_v25  ;;  %v4512_v24 = vld [vmem:[#allocation18 + $0x300] ss:$16 sps:$4 sm:$0xff]   ;;  %v4515_v25 = vld [vmem:[#allocation18 + $0x308] ss:$16 sps:$4 sm:$0xff]  }
 0x507   :  { %3365 = vmatprep.subr.bf16.mxu0 %v4450_v26  ;;  %3493 = vmatprep.subr.bf16.mxu1 %v4453_v27  ;;  %v4516_v26 = vld [vmem:[#allocation18 + $0x324] ss:$16 sps:$4 sm:$0xff]   ;;  %v4519_v27 = vld [vmem:[#allocation18 + $0x32c] ss:$16 sps:$4 sm:$0xff]  }
 0x50a   :  { %3367 = vmatpush1.bf16.msra.mxu0 %v4452_v28  ;;  %3495 = vmatpush1.bf16.msra.mxu1 %v4455_v29  ;;  %v4518_v28 = vld [vmem:[#allocation18 + $0x320] ss:$16 sps:$4 sm:$0xff]   ;;  %v4521_v29 = vld [vmem:[#allocation18 + $0x328] ss:$16 sps:$4 sm:$0xff]  }
 0x50b   :  { %3369 = vmatprep.subr.bf16.mxu0 %v4456_v30  ;;  %3497 = vmatprep.subr.bf16.mxu1 %v4459_v31  ;;  %v4522_v30 = vld [vmem:[#allocation18 + $0x344] ss:$16 sps:$4 sm:$0xff]   ;;  %v4525_v31 = vld [vmem:[#allocation18 + $0x34c] ss:$16 sps:$4 sm:$0xff]  }
 0x50e   :  { %3371 = vmatpush1.bf16.msra.mxu0 %v4458_v32  ;;  %3499 = vmatpush1.bf16.msra.mxu1 %v4461_v33  ;;  %v4524_v32 = vld [vmem:[#allocation18 + $0x340] ss:$16 sps:$4 sm:$0xff]   ;;  %v4527_v33 = vld [vmem:[#allocation18 + $0x348] ss:$16 sps:$4 sm:$0xff]  }
 0x50f   :  { %3373 = vmatprep.subr.bf16.mxu0 %v4462_v34  ;;  %3501 = vmatprep.subr.bf16.mxu1 %v4465_v35  ;;  %v4528_v34 = vld [vmem:[#allocation18 + $0x364] ss:$16 sps:$4 sm:$0xff]   ;;  %v4531_v35 = vld [vmem:[#allocation18 + $0x36c] ss:$16 sps:$4 sm:$0xff]  }
 0x5a4   :  { %v1069_v44 = vpop.f32.mrb[4].mxu0  ;;  %v5508_v45 = vpop.f32.mrb[4].mxu1 }
 0x5a5   :  { %v1070_v46 = vadd.f32 %v1069_v44, %v986_v41  ;;  %v1071_v47 = vpop.f32.mrb[5].mxu0  ;;  %v1142_v48 = vpop.f32.mrb[5].mxu1  ;;  %v4530_v41 = vld [vmem:[#allocation18 + $0x360] ss:$16 sps:$4 sm:$0xff]   ;;  %v4537_v44 = vld [vmem:[#allocation18 + $0x38c] ss:$16 sps:$4 sm:$0xff]  }
 0x5a6   :  { %v1072_v49 = vadd.f32 %v1071_v47, %v990_v42  ;;  %v1143_v50 = vadd.f32 %v1142_v48, %v998_v43  ;;  %v4533_v42 = vld [vmem:[#allocation18 + $0x368] ss:$16 sps:$4 sm:$0xff]   ;;  %v4534_v43 = vld [vmem:[#allocation18 + $0x384] ss:$16 sps:$4 sm:$0xff]  }
 0x5a7   :  { %v1145_v54 = vmax.f32 %v1070_v46, 0.0  ;;  %v4536_v46 = vld [vmem:[#allocation18 + $0x380] ss:$16 sps:$4 sm:$0xff]   ;;  %v4539_v47 = vld [vmem:[#allocation18 + $0x388] ss:$16 sps:$4 sm:$0xff]  }
 0x5a8   :  { %v1146_v51 = vmax.f32 %v1072_v49, 0.0  ;;  %v1148_v57 = vmax.f32 %v1143_v50, 0.0  ;;  %v4540_v48 = vld [vmem:[#allocation18 + $0x3a4] ss:$16 sps:$4 sm:$0xff]   ;;  %v4543_v49 = vld [vmem:[#allocation18 + $0x3ac] ss:$16 sps:$4 sm:$0xff]  }
 0x5a9   :  { %v4542_v50 = vld [vmem:[#allocation18 + $0x3a0] ss:$16 sps:$4 sm:$0xff]  }
 0x5aa   :  { %1619 = vmatprep.mubr.f32.mxu0 %v1146_v51  ;;  %1761 = vmatprep.mubr.f32.mxu1 %v1146_v51  ;;  %v4545_v51 = vld [vmem:[#allocation18 + $0x3a8] ss:$16 sps:$4 sm:$0xff]  }
 0x5ab   :  { %1620 = vmatmul.mubr.f32.vlgmr.msra.gmra.mrb[6].mxu0 %v1145_v54  ;;  %1762 = vmatmul.mubr.f32.vlgmr.msra.gmra.mrb[6].mxu1 %v1145_v54  ;;  %v4549_v54 = vld [vmem:[#allocation18 + $0x3cc] ss:$16 sps:$4 sm:$0xff]  }
 0x5ac   :  { %3375 = vmatpush1.bf16.msra.mxu0 %v4464_v52  ;;  %3503 = vmatpush1.bf16.msra.mxu1 %v4467_v53  ;;  %v993_v52 = vsub.s32 2, %v5486_v37  ;;  %v4546_v53 = vld [vmem:[#allocation18 + $0x3c4] ss:$16 sps:$4 sm:$0xff]   ;;  %v2889_v37 = vld [vmem:[%s5652_s17 + $0x40] sm:$0xff]  }
 0x5ad   :  { %1690 = vmatprep.mubr.f32.mxu0 %v1148_v57  ;;  %1832 = vmatprep.mubr.f32.mxu1 %v1148_v57 }
 0x5ae   :  { %3377 = vmatprep.subr.bf16.mxu0 %v4468_v55  ;;  %3505 = vmatprep.subr.bf16.mxu1 %v4471_v56  ;;  %v4548_v55 = vld [vmem:[#allocation18 + $0x3c0] ss:$16 sps:$4 sm:$0xff]   ;;  %v4551_v56 = vld [vmem:[#allocation18 + $0x3c8] ss:$16 sps:$4 sm:$0xff]   ;;  %v994_v57 = vrot.slane %v5498_v36, %v993_v52  ;;  %v4563_v36 = vld [vmem:[#allocation21 + $0x10] ss:$8 sps:$4 sm:$0xff]  }
 0x5b0   :  { %3379 = vmatpush1.bf16.msra.mxu0 %v4470_v58  ;;  %3507 = vmatpush1.bf16.msra.mxu1 %v4473_v59  ;;  %v4552_v58 = vld [vmem:[#allocation18 + $0x3e4] ss:$16 sps:$4 sm:$0xff]   ;;  %v4555_v59 = vld [vmem:[#allocation18 + $0x3ec] ss:$16 sps:$4 sm:$0xff]  }
 0x5b1   :  { %3381 = vmatprep.subr.bf16.mxu0 %v4474_v60  ;;  %3509 = vmatprep.subr.bf16.mxu1 %v4477_v61  ;;  %v4554_v60 = vld [vmem:[#allocation18 + $0x3e0] ss:$16 sps:$4 sm:$0xff]   ;;  %v4557_v61 = vld [vmem:[#allocation18 + $0x3e8] ss:$16 sps:$4 sm:$0xff]  }
 0x5b4   :  { %3383 = vmatpush1.bf16.msra.mxu0 %v4476_v62  ;;  %3511 = vmatpush1.bf16.msra.mxu1 %v4479_v63  ;;  %v1141_v62 = vadd.f32 %v5508_v45, %v994_v57  ;;  %v4558_v63 = vld [vmem:[#allocation21 + $0x4] ss:$8 sps:$4 sm:$0xff]   ;;  %v4569_v45 = vld [vmem:[#allocation21 + $0x30] ss:$8 sps:$4 sm:$0xff]  }
 0x5b5   :  { %3385 = vmatprep.subr.bf16.mxu0 %v4480_v2  ;;  %3513 = vmatprep.subr.bf16.mxu1 %v4483_v3  ;;  %v4560_v2 = vld [vmem:[#allocation21] ss:$8 sps:$4 sm:$0xff]  }
 0x5b6   :  { %v1147_v3 = vmax.f32 %v1141_v62, 0.0  ;;  %v4680_v57 = vld [vmem:[#allocation24 + $0x80] ss:$8 sps:$4 sm:$0xff]   ;;  %v4687_v62 = vld [vmem:[#allocation24 + $0xb4] ss:$8 sps:$4 sm:$0xff]  }
 0x5b8   :  { %3387 = vmatpush1.bf16.msra.mxu0 %v4482_v4  ;;  %3515 = vmatpush1.bf16.msra.mxu1 %v4485_v5  ;;  %v4561_v4 = vld [vmem:[#allocation21 + $0x14] ss:$8 sps:$4 sm:$0xff]   ;;  %v4564_v5 = vld [vmem:[#allocation21 + $0x24] ss:$8 sps:$4 sm:$0xff]  }
 0x5b9   :  { %3389 = vmatprep.subr.bf16.mxu0 %v4486_v6  ;;  %3517 = vmatprep.subr.bf16.mxu1 %v4489_v7  ;;  %v4566_v6 = vld [vmem:[#allocation21 + $0x20] ss:$8 sps:$4 sm:$0xff]   ;;  %v4567_v7 = vld [vmem:[#allocation21 + $0x34] ss:$8 sps:$4 sm:$0xff]  }
 0x5bc   :  { %3391 = vmatpush1.bf16.msra.mxu0 %v4488_v8  ;;  %3519 = vmatpush1.bf16.msra.mxu1 %v4491_v9  ;;  %v4570_v8 = vld [vmem:[#allocation21 + $0x44] ss:$8 sps:$4 sm:$0xff]   ;;  %v4572_v9 = vld [vmem:[#allocation21 + $0x40] ss:$8 sps:$4 sm:$0xff]  }
 0x5bd   :  { %3393 = vmatprep.subr.bf16.mxu0 %v4492_v10  ;;  %3521 = vmatprep.subr.bf16.mxu1 %v4495_v11  ;;  %v4573_v10 = vld [vmem:[#allocation21 + $0x54] ss:$8 sps:$4 sm:$0xff]   ;;  %v4575_v11 = vld [vmem:[#allocation21 + $0x50] ss:$8 sps:$4 sm:$0xff]  }
 0x5c0   :  { %3395 = vmatpush1.bf16.msra.mxu0 %v4494_v12  ;;  %3523 = vmatpush1.bf16.msra.mxu1 %v4497_v13  ;;  %v4576_v12 = vld [vmem:[#allocation21 + $0x64] ss:$8 sps:$4 sm:$0xff]   ;;  %v4578_v13 = vld [vmem:[#allocation21 + $0x60] ss:$8 sps:$4 sm:$0xff]  }
 0x5c1   :  { %3397 = vmatprep.subr.bf16.mxu0 %v4498_v14  ;;  %3525 = vmatprep.subr.bf16.mxu1 %v4501_v15  ;;  %v4579_v14 = vld [vmem:[#allocation21 + $0x74] ss:$8 sps:$4 sm:$0xff]   ;;  %v4581_v15 = vld [vmem:[#allocation21 + $0x70] ss:$8 sps:$4 sm:$0xff]  }
 0x5c4   :  { %3399 = vmatpush1.bf16.msra.mxu0 %v4500_v16  ;;  %3527 = vmatpush1.bf16.msra.mxu1 %v4503_v17  ;;  %v4582_v16 = vld [vmem:[#allocation21 + $0x84] ss:$8 sps:$4 sm:$0xff]   ;;  %v4584_v17 = vld [vmem:[#allocation21 + $0x80] ss:$8 sps:$4 sm:$0xff]  }
 0x5c5   :  { %3401 = vmatprep.subr.bf16.mxu0 %v4504_v18  ;;  %3529 = vmatprep.subr.bf16.mxu1 %v4507_v19  ;;  %v4585_v18 = vld [vmem:[#allocation21 + $0x94] ss:$8 sps:$4 sm:$0xff]   ;;  %v4587_v19 = vld [vmem:[#allocation21 + $0x90] ss:$8 sps:$4 sm:$0xff]  }
 0x5c8   :  { %3403 = vmatpush1.bf16.msra.mxu0 %v4506_v20  ;;  %3531 = vmatpush1.bf16.msra.mxu1 %v4509_v21  ;;  %v4588_v20 = vld [vmem:[#allocation21 + $0xa4] ss:$8 sps:$4 sm:$0xff]   ;;  %v4590_v21 = vld [vmem:[#allocation21 + $0xa0] ss:$8 sps:$4 sm:$0xff]  }
 0x5c9   :  { %3405 = vmatprep.subr.bf16.mxu0 %v4510_v22  ;;  %3533 = vmatprep.subr.bf16.mxu1 %v4513_v23  ;;  %v4591_v22 = vld [vmem:[#allocation21 + $0xb4] ss:$8 sps:$4 sm:$0xff]   ;;  %v4593_v23 = vld [vmem:[#allocation21 + $0xb0] ss:$8 sps:$4 sm:$0xff]  }
 0x5cc   :  { %3407 = vmatpush1.bf16.msra.mxu0 %v4512_v24  ;;  %3535 = vmatpush1.bf16.msra.mxu1 %v4515_v25  ;;  %v4594_v24 = vld [vmem:[#allocation21 + $0xc4] ss:$8 sps:$4 sm:$0xff]   ;;  %v4596_v25 = vld [vmem:[#allocation21 + $0xc0] ss:$8 sps:$4 sm:$0xff]  }
 0x5cd   :  { %3409 = vmatprep.subr.bf16.mxu0 %v4516_v26  ;;  %3537 = vmatprep.subr.bf16.mxu1 %v4519_v27  ;;  %v4597_v26 = vld [vmem:[#allocation21 + $0xd4] ss:$8 sps:$4 sm:$0xff]   ;;  %v4599_v27 = vld [vmem:[#allocation21 + $0xd0] ss:$8 sps:$4 sm:$0xff]  }
 0x5d0   :  { %3411 = vmatpush1.bf16.msra.mxu0 %v4518_v28  ;;  %3539 = vmatpush1.bf16.msra.mxu1 %v4521_v29  ;;  %v4600_v28 = vld [vmem:[#allocation21 + $0xe4] ss:$8 sps:$4 sm:$0xff]   ;;  %v4602_v29 = vld [vmem:[#allocation21 + $0xe0] ss:$8 sps:$4 sm:$0xff]  }
 0x5d1   :  { %3413 = vmatprep.subr.bf16.mxu0 %v4522_v30  ;;  %3541 = vmatprep.subr.bf16.mxu1 %v4525_v31  ;;  %v4603_v30 = vld [vmem:[#allocation21 + $0xf4] ss:$8 sps:$4 sm:$0xff]   ;;  %v4605_v31 = vld [vmem:[#allocation21 + $0xf0] ss:$8 sps:$4 sm:$0xff]  }
 0x5d4   :  { %3415 = vmatpush1.bf16.msra.mxu0 %v4524_v32  ;;  %3543 = vmatpush1.bf16.msra.mxu1 %v4527_v33  ;;  %v4606_v32 = vld [vmem:[#allocation21 + $0x104] ss:$8 sps:$4 sm:$0xff]  }
 0x5d5   :  { %3417 = vmatprep.subr.bf16.mxu0 %v4528_v34  ;;  %3545 = vmatprep.subr.bf16.mxu1 %v4531_v35  ;;  %v4654_v33 = vld [vmem:[#allocation24 + $0x4] ss:$8 sps:$4 sm:$0xff]   ;;  %v4656_v34 = vld [vmem:[#allocation24] ss:$8 sps:$4 sm:$0xff]   ;;  %v4657_v35 = vld [vmem:[#allocation24 + $0x14] ss:$8 sps:$4 sm:$0xff]  }
 0x5d8   :  { %3419 = vmatpush1.bf16.msra.mxu0 %v4530_v41  ;;  %3547 = vmatpush1.bf16.msra.mxu1 %v4533_v42  ;;  %v4659_v41 = vld [vmem:[#allocation24 + $0x10] ss:$8 sps:$4 sm:$0xff]   ;;  %v4660_v42 = vld [vmem:[#allocation24 + $0x24] ss:$8 sps:$4 sm:$0xff]  }
 0x5d9   :  { %3421 = vmatprep.subr.bf16.mxu0 %v4534_v43  ;;  %3549 = vmatprep.subr.bf16.mxu1 %v4537_v44  ;;  %v4662_v43 = vld [vmem:[#allocation24 + $0x20] ss:$8 sps:$4 sm:$0xff]   ;;  %v4663_v44 = vld [vmem:[#allocation24 + $0x34] ss:$8 sps:$4 sm:$0xff]  }
 0x5dc   :  { %3423 = vmatpush1.bf16.msra.mxu0 %v4536_v46  ;;  %3551 = vmatpush1.bf16.msra.mxu1 %v4539_v47  ;;  %v4665_v46 = vld [vmem:[#allocation24 + $0x30] ss:$8 sps:$4 sm:$0xff]   ;;  %v4666_v47 = vld [vmem:[#allocation24 + $0x44] ss:$8 sps:$4 sm:$0xff]  }
 0x5dd   :  { %3425 = vmatprep.subr.bf16.mxu0 %v4540_v48  ;;  %3553 = vmatprep.subr.bf16.mxu1 %v4543_v49  ;;  %v4668_v48 = vld [vmem:[#allocation24 + $0x40] ss:$8 sps:$4 sm:$0xff]   ;;  %v4669_v49 = vld [vmem:[#allocation24 + $0x54] ss:$8 sps:$4 sm:$0xff]  }
 0x5e0   :  { %3427 = vmatpush1.bf16.msra.mxu0 %v4542_v50  ;;  %3555 = vmatpush1.bf16.msra.mxu1 %v4545_v51  ;;  %v4671_v50 = vld [vmem:[#allocation24 + $0x50] ss:$8 sps:$4 sm:$0xff]   ;;  %v4672_v51 = vld [vmem:[#allocation24 + $0x64] ss:$8 sps:$4 sm:$0xff]  }
 0x5e1   :  { %3429 = vmatprep.subr.bf16.mxu0 %v4546_v53  ;;  %3557 = vmatprep.subr.bf16.mxu1 %v4549_v54  ;;  %v4674_v53 = vld [vmem:[#allocation24 + $0x60] ss:$8 sps:$4 sm:$0xff]   ;;  %v4675_v54 = vld [vmem:[#allocation24 + $0x74] ss:$8 sps:$4 sm:$0xff]  }
 0x5e4   :  { %3431 = vmatpush1.bf16.msra.mxu0 %v4548_v55  ;;  %3559 = vmatpush1.bf16.msra.mxu1 %v4551_v56  ;;  %v4677_v55 = vld [vmem:[#allocation24 + $0x70] ss:$8 sps:$4 sm:$0xff]   ;;  %v4678_v56 = vld [vmem:[#allocation24 + $0x84] ss:$8 sps:$4 sm:$0xff]  }
 0x5e5   :  { %3433 = vmatprep.subr.bf16.mxu0 %v4552_v58  ;;  %3561 = vmatprep.subr.bf16.mxu1 %v4555_v59  ;;  %v4681_v58 = vld [vmem:[#allocation24 + $0x94] ss:$8 sps:$4 sm:$0xff]   ;;  %v4683_v59 = vld [vmem:[#allocation24 + $0x90] ss:$8 sps:$4 sm:$0xff]  }
 0x5e8   :  { %3435 = vmatpush1.bf16.msra.mxu0 %v4554_v60  ;;  %3563 = vmatpush1.bf16.msra.mxu1 %v4557_v61  ;;  %v4684_v60 = vld [vmem:[#allocation24 + $0xa4] ss:$8 sps:$4 sm:$0xff]   ;;  %v4686_v61 = vld [vmem:[#allocation24 + $0xa0] ss:$8 sps:$4 sm:$0xff]  }
 0x5e9   :  { %3565 = vmatprep.subr.bf16.mxu0 %v4558_v63  ;;  %3693 = vmatprep.subr.bf16.mxu1 %v4654_v33  ;;  %v4689_v63 = vld [vmem:[#allocation24 + $0xb0] ss:$8 sps:$4 sm:$0xff]  }
 0x5ea   :  { %v4629_v33 = vld [vmem:[#allocation21 + $0x170] ss:$8 sps:$4 sm:$0xff]  }
 0x5eb   :  { %1691 = vmatmul.mubr.f32.vlgmr.msra.gmra.mrb[6].mxu0 %v1147_v3  ;;  %1833 = vmatmul.mubr.f32.vlgmr.msra.gmra.mrb[6].mxu1 %v1147_v3  ;;  %v4692_v3 = vld [vmem:[#allocation24 + $0xc0] ss:$8 sps:$4 sm:$0xff]  }
 0x5ec   :  { %3567 = vmatpush1.bf16.msra.mxu0 %v4560_v2  ;;  %3695 = vmatpush1.bf16.msra.mxu1 %v4656_v34  ;;  %v4690_v2 = vld [vmem:[#allocation24 + $0xc4] ss:$8 sps:$4 sm:$0xff]  }
 0x5ed   :  { %3569 = vmatprep.subr.bf16.mxu0 %v4561_v4  ;;  %3697 = vmatprep.subr.bf16.mxu1 %v4657_v35  ;;  %v4693_v4 = vld [vmem:[#allocation24 + $0xd4] ss:$8 sps:$4 sm:$0xff]   ;;  %v4630_v34 = vld [vmem:[#allocation21 + $0x184] ss:$8 sps:$4 sm:$0xff]  }
 0x5ee   :  { %v4632_v35 = vld [vmem:[#allocation21 + $0x180] ss:$8 sps:$4 sm:$0xff]  }
 0x5f0   :  { %3571 = vmatpush1.bf16.msra.mxu0 %v4563_v36  ;;  %3699 = vmatpush1.bf16.msra.mxu1 %v4659_v41  ;;  %v5515_v36 = vld [vmem:[#allocation19] sm:$0xf] }
 0x5f1   :  { %3573 = vmatprep.subr.bf16.mxu0 %v4564_v5  ;;  %3701 = vmatprep.subr.bf16.mxu1 %v4660_v42  ;;  %v4695_v5 = vld [vmem:[#allocation24 + $0xd0] ss:$8 sps:$4 sm:$0xff]  }
 0x5f2   :  { %v4633_v41 = vld [vmem:[#allocation21 + $0x194] ss:$8 sps:$4 sm:$0xff]   ;;  %v4635_v42 = vld [vmem:[#allocation21 + $0x190] ss:$8 sps:$4 sm:$0xff]  }
 0x5f4   :  { %3575 = vmatpush1.bf16.msra.mxu0 %v4566_v6  ;;  %3703 = vmatpush1.bf16.msra.mxu1 %v4662_v43  ;;  %v4696_v6 = vld [vmem:[#allocation24 + $0xe4] ss:$8 sps:$4 sm:$0xff]  }
 0x5f5   :  { %3577 = vmatprep.subr.bf16.mxu0 %v4567_v7  ;;  %3705 = vmatprep.subr.bf16.mxu1 %v4663_v44  ;;  %v1538_v7 = vrot.slane %v5515_v36, %v5489_v38  ;;  %v4636_v43 = vld [vmem:[#allocation21 + $0x1a4] ss:$8 sps:$4 sm:$0xff]   ;;  %v4638_v44 = vld [vmem:[#allocation21 + $0x1a0] ss:$8 sps:$4 sm:$0xff]  }
 0x5f8   :  { %3579 = vmatpush1.bf16.msra.mxu0 %v4569_v45  ;;  %3707 = vmatpush1.bf16.msra.mxu1 %v4665_v46  ;;  %v1542_v45 = vrot.slane %v5515_v36, %v5492_v40  ;;  %v4639_v46 = vld [vmem:[#allocation21 + $0x1b4] ss:$8 sps:$4 sm:$0xff]  }
 0x5f9   :  { %3581 = vmatprep.subr.bf16.mxu0 %v4570_v8  ;;  %3709 = vmatprep.subr.bf16.mxu1 %v4666_v47  ;;  %v1550_v8 = vrot.slane %v5515_v36, %v997_v39  ;;  %v4611_v39 = vld [vmem:[#allocation21 + $0x110] ss:$8 sps:$4 sm:$0xff]  }
 0x5fa   :  { %v4641_v47 = vld [vmem:[#allocation21 + $0x1b0] ss:$8 sps:$4 sm:$0xff]  }
 0x5fc   :  { %3583 = vmatpush1.bf16.msra.mxu0 %v4572_v9  ;;  %3711 = vmatpush1.bf16.msra.mxu1 %v4668_v48  ;;  %v4698_v9 = vld [vmem:[#allocation24 + $0xe0] ss:$8 sps:$4 sm:$0xff]  }
 0x5fd   :  { %3585 = vmatprep.subr.bf16.mxu0 %v4573_v10  ;;  %3713 = vmatprep.subr.bf16.mxu1 %v4669_v49  ;;  %v4642_v48 = vld [vmem:[#allocation21 + $0x1c4] ss:$8 sps:$4 sm:$0xff]   ;;  %v4644_v49 = vld [vmem:[#allocation21 + $0x1c0] ss:$8 sps:$4 sm:$0xff]  }
 0x600   :  { %3587 = vmatpush1.bf16.msra.mxu0 %v4575_v11  ;;  %3715 = vmatpush1.bf16.msra.mxu1 %v4671_v50  ;;  %v4645_v50 = vld [vmem:[#allocation21 + $0x1d4] ss:$8 sps:$4 sm:$0xff]  }
 0x601   :  { %3589 = vmatprep.subr.bf16.mxu0 %v4576_v12  ;;  %3717 = vmatprep.subr.bf16.mxu1 %v4672_v51  ;;  %v4647_v51 = vld [vmem:[#allocation21 + $0x1d0] ss:$8 sps:$4 sm:$0xff]  }
 0x604   :  { %3591 = vmatpush1.bf16.msra.mxu0 %v4578_v13  ;;  %3719 = vmatpush1.bf16.msra.mxu1 %v4674_v53  ;;  %v4648_v53 = vld [vmem:[#allocation21 + $0x1e4] ss:$8 sps:$4 sm:$0xff]  }
 0x605   :  { %3593 = vmatprep.subr.bf16.mxu0 %v4579_v14  ;;  %3721 = vmatprep.subr.bf16.mxu1 %v4675_v54  ;;  %v4650_v54 = vld [vmem:[#allocation21 + $0x1e0] ss:$8 sps:$4 sm:$0xff]  }
 0x608   :  { %3595 = vmatpush1.bf16.msra.mxu0 %v4581_v15  ;;  %3723 = vmatpush1.bf16.msra.mxu1 %v4677_v55  ;;  %v1546_v55 = vrot.slane %v5515_v36, %v993_v52  ;;  %v2035_v52 = vld [vmem:[#allocation22] sm:$0x3] }
 0x609   :  { %3597 = vmatprep.subr.bf16.mxu0 %v4582_v16  ;;  %3725 = vmatprep.subr.bf16.mxu1 %v4678_v56  ;;  %v4651_v56 = vld [vmem:[#allocation21 + $0x1f4] ss:$8 sps:$4 sm:$0xff]  }
 0x60c   :  { %3599 = vmatpush1.bf16.msra.mxu0 %v4584_v17  ;;  %3727 = vmatpush1.bf16.msra.mxu1 %v4680_v57  ;;  %v4653_v57 = vld [vmem:[#allocation21 + $0x1f0] ss:$8 sps:$4 sm:$0xff]  }
 0x60d   :  { %3601 = vmatprep.subr.bf16.mxu0 %v4585_v18  ;;  %3729 = vmatprep.subr.bf16.mxu1 %v4681_v58  ;;  %v4608_v18 = vld [vmem:[#allocation21 + $0x100] ss:$8 sps:$4 sm:$0xff]  }
 0x610   :  { %3603 = vmatpush1.bf16.msra.mxu0 %v4587_v19  ;;  %3731 = vmatpush1.bf16.msra.mxu1 %v4683_v59 }
 0x611   :  { %3605 = vmatprep.subr.bf16.mxu0 %v4588_v20  ;;  %3733 = vmatprep.subr.bf16.mxu1 %v4684_v60  ;;  %v4609_v20 = vld [vmem:[#allocation21 + $0x114] ss:$8 sps:$4 sm:$0xff]  }
 0x612   :  { %v4699_v60 = vld [vmem:[#allocation24 + $0xf4] ss:$8 sps:$4 sm:$0xff]  }
 0x614   :  { %3607 = vmatpush1.bf16.msra.mxu0 %v4590_v21  ;;  %3735 = vmatpush1.bf16.msra.mxu1 %v4686_v61  ;;  %v4701_v61 = vld [vmem:[#allocation24 + $0xf0] ss:$8 sps:$4 sm:$0xff]  }
 0x615   :  { %3609 = vmatprep.subr.bf16.mxu0 %v4591_v22  ;;  %3737 = vmatprep.subr.bf16.mxu1 %v4687_v62  ;;  %v4612_v22 = vld [vmem:[#allocation21 + $0x124] ss:$8 sps:$4 sm:$0xff]   ;;  %v2040_v62 = vrot.slane %v2035_v52, %v5489_v38 }
 0x618   :  { %3611 = vmatpush1.bf16.msra.mxu0 %v4593_v23  ;;  %3739 = vmatpush1.bf16.msra.mxu1 %v4689_v63  ;;  %v4614_v23 = vld [vmem:[#allocation21 + $0x120] ss:$8 sps:$4 sm:$0xff]   ;;  %v2044_v63 = vrot.slane %v2035_v52, %v5492_v40 }
 0x619   :  { %3613 = vmatprep.subr.bf16.mxu0 %v4594_v24  ;;  %3741 = vmatprep.subr.bf16.mxu1 %v4690_v2  ;;  %v4615_v24 = vld [vmem:[#allocation21 + $0x134] ss:$8 sps:$4 sm:$0xff]  }
 0x61c   :  { %3615 = vmatpush1.bf16.msra.mxu0 %v4596_v25  ;;  %3743 = vmatpush1.bf16.msra.mxu1 %v4692_v3  ;;  %v4617_v25 = vld [vmem:[#allocation21 + $0x130] ss:$8 sps:$4 sm:$0xff]  }
 0x61d   :  { %3617 = vmatprep.subr.bf16.mxu0 %v4597_v26  ;;  %3745 = vmatprep.subr.bf16.mxu1 %v4693_v4  ;;  %v4618_v26 = vld [vmem:[#allocation21 + $0x144] ss:$8 sps:$4 sm:$0xff]  }
 0x620   :  { %3619 = vmatpush1.bf16.msra.mxu0 %v4599_v27  ;;  %3747 = vmatpush1.bf16.msra.mxu1 %v4695_v5  ;;  %v4620_v27 = vld [vmem:[#allocation21 + $0x140] ss:$8 sps:$4 sm:$0xff]  }
 0x621   :  { %3621 = vmatprep.subr.bf16.mxu0 %v4600_v28  ;;  %3749 = vmatprep.subr.bf16.mxu1 %v4696_v6  ;;  %v4621_v28 = vld [vmem:[#allocation21 + $0x154] ss:$8 sps:$4 sm:$0xff]  }
 0x624   :  { %3623 = vmatpush1.bf16.msra.mxu0 %v4602_v29  ;;  %3751 = vmatpush1.bf16.msra.mxu1 %v4698_v9  ;;  %v4623_v29 = vld [vmem:[#allocation21 + $0x150] ss:$8 sps:$4 sm:$0xff]   ;;  %v2891_v9 = vld [vmem:[%s5652_s17 + $0x50] sm:$0xff]  }
 0x625   :  { %3625 = vmatprep.subr.bf16.mxu0 %v4603_v30  ;;  %v4624_v30 = vld [vmem:[#allocation21 + $0x164] ss:$8 sps:$4 sm:$0xff]   ;;  %3753 = vmatprep.subr.bf16.mxu1 %v4699_v60 }
 0x628   :  { %3627 = vmatpush1.bf16.msra.mxu0 %v4605_v31  ;;  %v4626_v31 = vld [vmem:[#allocation21 + $0x160] ss:$8 sps:$4 sm:$0xff]   ;;  %3755 = vmatpush1.bf16.msra.mxu1 %v4701_v61 }
 0x629   :  { %3629 = vmatprep.subr.bf16.mxu0 %v4606_v32  ;;  %v4627_v32 = vld [vmem:[#allocation21 + $0x174] ss:$8 sps:$4 sm:$0xff]   ;;  %3757 = vmatprep.subr.bf16.mxu1 %v2889_v37 }
 0x6be   :  { %v1692_v10 = vpop.f32.mrb[6].mxu0  ;;  %v5524_v11 = vpop.f32.mrb[6].mxu1 }
 0x6bf   :  { %v3824_v12 = vadd.f32 %v1692_v10, %v1538_v7  ;;  %v1694_v13 = vpop.f32.mrb[7].mxu0  ;;  %v1836_v14 = vpop.f32.mrb[7].mxu1  ;;  %v3826_v58 = vadd.f32 %v5524_v11, %v1546_v55  ;;  %v2767_v7 = vld [vmem:[%s5652_s17] sm:$0xff]   ;;  %v2883_v10 = vld [vmem:[%s5652_s17 + $0x10] sm:$0xff]   ;;  %v2892_v11 = vld [vmem:[%s5652_s17 + $0x58] sm:$0xff]  }
 0x6c0   :  { %v3825_v15 = vadd.f32 %v1694_v13, %v1542_v45  ;;  %v3827_v16 = vadd.f32 %v1836_v14, %v1550_v8  ;;  %v2890_v45 = vld [vmem:[%s5652_s17 + $0x48] sm:$0xff]   ;;  %v2893_v13 = vld [vmem:[%s5652_s17 + $0x60] sm:$0xff]  }
 0x6c1   :  { %v1839_v19 = vmax.f32 %v3824_v12, 0.0  ;;  %v1841_v59 = vmax.f32 %v3826_v58, 0.0  ;;  %v2882_v8 = vld [vmem:[%s5652_s17 + $0x8] sm:$0xff]   ;;  %v2884_v12 = vld [vmem:[%s5652_s17 + $0x18] sm:$0xff]   ;;  %v2885_v14 = vld [vmem:[%s5652_s17 + $0x20] sm:$0xff]  }
 0x6c2   :  { %v1840_v17 = vmax.f32 %v3825_v15, 0.0  ;;  %v1842_v21 = vmax.f32 %v3827_v16, 0.0  ;;  %v2894_v15 = vld [vmem:[%s5652_s17 + $0x68] sm:$0xff]  }
 0x6c3   :  { %v2886_v16 = vld [vmem:[%s5652_s17 + $0x28] sm:$0xff]  }
 0x6c4   :  { %2111 = vmatprep.mubr.f32.mxu0 %v1840_v17  ;;  %v2895_v17 = vld [vmem:[%s5652_s17 + $0x70] sm:$0xff]  }
 0x6c5   :  { %2112 = vmatmul.mubr.f32.vlgmr.msra.gmra.mrb[8].mxu0 %v1839_v19  ;;  %v2896_v19 = vld [vmem:[%s5652_s17 + $0x78] sm:$0xff]  }
 0x6c6   :  { %3631 = vmatpush1.bf16.msra.mxu0 %v4608_v18  ;;  %2182 = vmatprep.mubr.f32.mxu0 %v1842_v21  ;;  %v2887_v18 = vld [vmem:[%s5652_s17 + $0x30] sm:$0xff]   ;;  %v2831_v21 = vld [vmem:[%s5654_s19] sm:$0xff]  }
 0x6c7   :  { %3633 = vmatprep.subr.bf16.mxu0 %v4609_v20  ;;  %v2888_v20 = vld [vmem:[%s5652_s17 + $0x38] sm:$0xff]  }
 0x6ca   :  { %3635 = vmatpush1.bf16.msra.mxu0 %v4611_v39  ;;  %v2897_v39 = vld [vmem:[%s5654_s19 + $0x8] sm:$0xff]  }
 0x6cb   :  { %3637 = vmatprep.subr.bf16.mxu0 %v4612_v22  ;;  %v2898_v22 = vld [vmem:[%s5654_s19 + $0x10] sm:$0xff]  }
 0x6ce   :  { %3639 = vmatpush1.bf16.msra.mxu0 %v4614_v23  ;;  %v2899_v23 = vld [vmem:[%s5654_s19 + $0x18] sm:$0xff]  }
 0x6cf   :  { %3641 = vmatprep.subr.bf16.mxu0 %v4615_v24  ;;  %v2900_v24 = vld [vmem:[%s5654_s19 + $0x20] sm:$0xff]  }
 0x6d2   :  { %3643 = vmatpush1.bf16.msra.mxu0 %v4617_v25  ;;  %v2901_v25 = vld [vmem:[%s5654_s19 + $0x28] sm:$0xff]  }
 0x6d3   :  { %3645 = vmatprep.subr.bf16.mxu0 %v4618_v26  ;;  %v2287_v26 = vld [vmem:[#allocation25] sm:$0x3] }
 0x6d6   :  { %3647 = vmatpush1.bf16.msra.mxu0 %v4620_v27  ;;  %v2292_v27 = vrot.slane %v2287_v26, %v5489_v38  ;;  %v2903_v38 = vld [vmem:[%s5654_s19 + $0x38] sm:$0xff]  }
 0x6d7   :  { %3649 = vmatprep.subr.bf16.mxu0 %v4621_v28  ;;  %v2296_v28 = vrot.slane %v2287_v26, %v5492_v40  ;;  %v2863_v40 = vld [vmem:[#allocation27] sm:$0xff]  }
 0x6da   :  { %3651 = vmatpush1.bf16.msra.mxu0 %v4623_v29 }
 0x6db   :  { %3653 = vmatprep.subr.bf16.mxu0 %v4624_v30 }
 0x6de   :  { %3655 = vmatpush1.bf16.msra.mxu0 %v4626_v31 }
 0x6df   :  { %3657 = vmatprep.subr.bf16.mxu0 %v4627_v32 }
 0x6e2   :  { %3659 = vmatpush1.bf16.msra.mxu0 %v4629_v33 }
 0x6e3   :  { %3661 = vmatprep.subr.bf16.mxu0 %v4630_v34 }
 0x6e6   :  { %3663 = vmatpush1.bf16.msra.mxu0 %v4632_v35  ;;  %v2902_v35 = vld [vmem:[%s5654_s19 + $0x30] sm:$0xff]  }
 0x6e7   :  { %3665 = vmatprep.subr.bf16.mxu0 %v4633_v41  ;;  %v2904_v41 = vld [vmem:[#allocation27 + $0x8] sm:$0xff]  }
 0x6ea   :  { %3667 = vmatpush1.bf16.msra.mxu0 %v4635_v42 }
 0x6eb   :  { %3669 = vmatprep.subr.bf16.mxu0 %v4636_v43  ;;  %v2738_v43 = vld [vmem:[%s5653_s18] ss:$0 sm:$0xff]  ;;  %s5687_s18 = sld [smem:[#allocation46_spill]] }
 0x6ee   :  { %3671 = vmatpush1.bf16.msra.mxu0 %v4638_v44 }
 0x6ef   :  { %3673 = vmatprep.subr.bf16.mxu0 %v4639_v46 }
 0x6f1   :  { %v2740_v55 = vld [vmem:[%s5687_s18] ss:$0 sm:$0xff] }
 0x6f2   :  { %3675 = vmatpush1.bf16.msra.mxu0 %v4641_v47 }
 0x6f3   :  { %3677 = vmatprep.subr.bf16.mxu0 %v4642_v48 }
 0x6f6   :  { %3679 = vmatpush1.bf16.msra.mxu0 %v4644_v49  ;;  %v2906_v49 = vld [vmem:[#allocation27 + $0x18] sm:$0xff]  }
 0x6f7   :  { %3681 = vmatprep.subr.bf16.mxu0 %v4645_v50  ;;  %v2739_v50 = vld [vmem:[%s5686_s14] ss:$0 sm:$0xff] }
 0x6fa   :  { %3683 = vmatpush1.bf16.msra.mxu0 %v4647_v51 }
 0x6fb   :  { %3685 = vmatprep.subr.bf16.mxu0 %v4648_v53 }
 0x6fe   :  { %3687 = vmatpush1.bf16.msra.mxu0 %v4650_v54 }
 0x6ff   :  { %3689 = vmatprep.subr.bf16.mxu0 %v4651_v56 }
 0x702   :  { %3691 = vmatpush1.bf16.msra.mxu0 %v4653_v57 }
 0x703   :  { %3788 = vmatprep.subr.bf16.mxu0 %v5117_v0 }
 0x705   :  { %2183 = vmatmul.mubr.f32.vlgmr.msra.gmra.mrb[8].mxu0 %v1841_v59 }
 0x706   :  { %3044 = vmatprep.mubr.msk.f32.mxu0 %vm5118_vm0, %v5119_v1  ;;  %3790 = vmatpush3.bf16.msra.mxu0 %v2831_v21 }
 0x707   :  { %3791 = vmatprep.subr.bf16.mxu0 %v5117_v0 }
 0x70a   :  { %3793 = vmatpush3.bf16.msra.mxu0 %v2897_v39 }
 0x70b   :  { %3794 = vmatprep.subr.bf16.mxu0 %v5117_v0 }
 0x70e   :  { %3796 = vmatpush3.bf16.msra.mxu0 %v2898_v22 }
 0x70f   :  { %3797 = vmatprep.subr.bf16.mxu0 %v5117_v0 }
 0x712   :  { %3799 = vmatpush3.bf16.msra.mxu0 %v2899_v23 }
 0x713   :  { %3800 = vmatprep.subr.bf16.mxu0 %v5117_v0 }
 0x716   :  { %3802 = vmatpush3.bf16.msra.mxu0 %v2900_v24 }
 0x717   :  { %3803 = vmatprep.subr.bf16.mxu0 %v5117_v0 }
 0x71a   :  { %3805 = vmatpush3.bf16.msra.mxu0 %v2901_v25 }
 0x71b   :  { %3806 = vmatprep.subr.bf16.mxu0 %v5117_v0 }
 0x71e   :  { %3808 = vmatpush3.bf16.msra.mxu0 %v2902_v35 }
 0x71f   :  { %3809 = vmatprep.subr.bf16.mxu0 %v5117_v0 }
 0x722   :  { %3811 = vmatpush3.bf16.msra.mxu0 %v2903_v38 }
 0x7d8   :  { %v2184_v2 = vpop.f32.mrb[8].mxu0 }
 0x7d9   :  { %v3828_v3 = vadd.f32 %v2184_v2, %v2040_v62  ;;  %v2186_v4 = vpop.f32.mrb[9].mxu0 }
 0x7da   :  { %v3829_v36 = vadd.f32 %v2186_v4, %v2044_v63 }
 0x7db   :  { %v2189_v6 = vmax.f32 %v3828_v3, 0.0 }
 0x7dc   :  { %v2190_v5 = vmax.f32 %v3829_v36, 0.0 }
 0x7de   :  { %2363 = vmatprep.mubr.f32.mxu1 %v2190_v5 }
 0x7df   :  { %2364 = vmatmul.mubr.f32.vlgmr.msra.gmra.mrb[8].mxu1 %v2189_v6 }
 0x7e0   :  { %3759 = vmatpush3.bf16.msra.mxu1 %v2767_v7 }
 0x7e1   :  { %3761 = vmatprep.subr.bf16.mxu1 %v2890_v45 }
 0x7e4   :  { %3763 = vmatpush3.bf16.msra.mxu1 %v2882_v8 }
 0x7e5   :  { %3765 = vmatprep.subr.bf16.mxu1 %v2891_v9 }
 0x7e8   :  { %3767 = vmatpush3.bf16.msra.mxu1 %v2883_v10 }
 0x7e9   :  { %3769 = vmatprep.subr.bf16.mxu1 %v2892_v11 }
 0x7ec   :  { %3771 = vmatpush3.bf16.msra.mxu1 %v2884_v12 }
 0x7ed   :  { %3773 = vmatprep.subr.bf16.mxu1 %v2893_v13 }
 0x7f0   :  { %3775 = vmatpush3.bf16.msra.mxu1 %v2885_v14 }
 0x7f1   :  { %3777 = vmatprep.subr.bf16.mxu1 %v2894_v15 }
 0x7f4   :  { %3779 = vmatpush3.bf16.msra.mxu1 %v2886_v16 }
 0x7f5   :  { %3781 = vmatprep.subr.bf16.mxu1 %v2895_v17 }
 0x7f8   :  { %3783 = vmatpush3.bf16.msra.mxu1 %v2887_v18 }
 0x7f9   :  { %3785 = vmatprep.subr.bf16.mxu1 %v2896_v19 }
 0x7fc   :  { %3787 = vmatpush3.bf16.msra.mxu1 %v2888_v20 }
 0x7fd   :  { %3812 = vmatprep.subr.bf16.mxu1 %v5117_v0 }
 0x8b2   :  { %v2365_v29 = vpop.f32.mrb[8].mxu1 }
 0x8b3   :  { %v2366_v30 = vadd.f32 %v2365_v29, %v2292_v27  ;;  %v2367_v31 = vpop.f32.mrb[9].mxu1 }
 0x8b4   :  { %v2368_v32 = vadd.f32 %v2367_v31, %v2296_v28 }
 0x8b5   :  { %v2370_v34 = vmax.f32 %v2366_v30, 0.0 }
 0x8b6   :  { %v2371_v33 = vmax.f32 %v2368_v32, 0.0 }
 0x8b8   :  { %2507 = vmatprep.mubr.f32.mxu1 %v2371_v33 }
 0x8b9   :  { %2508 = vmatmul.mubr.f32.vlgmr.msra.gmra.mrb[10].mxu1 %v2370_v34 }
 0x8ba   :  { %3063 = vmatprep.mubr.msk.f32.mxu1 %vm5118_vm0, %v5119_v1  ;;  %3814 = vmatpush3.bf16.msra.mxu1 %v2863_v40  ;;  %v2905_v1 = vld [vmem:[#allocation27 + $0x10] sm:$0xff]  }
 0x8bb   :  { %3815 = vmatprep.subr.bf16.mxu1 %v5117_v0 }
 0x8be   :  { %3817 = vmatpush3.bf16.msra.mxu1 %v2904_v41 }
 0x8bf   :  { %3818 = vmatprep.subr.bf16.mxu1 %v5117_v0 }
 0x8c2   :  { %3820 = vmatpush3.bf16.msra.mxu1 %v2905_v1 }
 0x8c3   :  { %3821 = vmatprep.subr.bf16.mxu1 %v5117_v0 }
 0x8c6   :  { %3823 = vmatpush3.bf16.msra.mxu1 %v2906_v49 }
 0x98c   :  { %v2953_v42 = vpop.f32.mrb[10].mxu1 }
 0x98d   :  { %v2954_v44 = vpop.f32.mrb[11].mxu1 }
 0x98e   :  { %v2955_v46 = vadd.f32 %v2954_v44, %v2953_v42 }
 0x990   :  { %v2510_v47 = vadd.f32 %v2955_v46, %v2738_v43 }
 0x992   :  { %v2513_v48 = vmax.f32 %v2510_v47, 0.0 }
 0x994   :  { %3045 = vmatmul.mubr.f32.vlgmr.msra.gmra.mrb[10].mxu0 %v2513_v48 }
 0xa67   :  { %v2619_v51 = vpop.f32.mrb[10].mxu0 }
 0xa68   :  { %v2620_v53 = vadd.f32 %v2739_v50, %v2619_v51  ;;  %v3046_v54 = vpop.f32.mrb[11].mxu0 }
 0xa6a   :  { %v2623_v0 = vmax.f32 %v2620_v53, 0.0 }
 0xa6c   :  { %3064 = vmatmul.mubr.msk.f32.vlgmr.msra.gmra.mrb[12].mxu1 %vm400_vm2, %v2623_v0 }
 0xb3f   :  { %v2716_v56 = vpop.f32.mrb[12].mxu1 }
 0xb40   :  { %v2717_v57 = vadd.f32 %v2740_v55, %v2716_v56  ;;  %v3065_v58 = vpop.f32.mrb[13].mxu1 }
 0xb42   :  { %2720 = vst [vmem:[%s5688_s1] sm:$0xff] %v2717_v57 }
 0xb43   :  { %2725 = vsyncpa [#allocation3], 1 }
 0xb44   :  { %2726 = vsyncpa [#allocation5], 1 }
 0xb45   :  { %2727 = vsyncpa [#allocation8], 1 }
 0xb46   :  { %2728 = vsyncpa [#allocation11], 1 }
 0xb47   :  { %2729 = vsyncpa [#allocation14], 1 }
 0xb48   :  { %2730 = vsyncpa [#allocation17], 1 }
 0xb49   :  { %2731 = vsyncpa [#allocation20], 1 }
 0xb4a   :  { %2732 = vsyncpa [#allocation23], 1 }
 0xb4b   :  { %2733 = vsyncpa [#allocation26], 1 }

</bundles_post_ra>
